<compile_context>
chip_gen: v7x
topology: tpu7x:2x2x1
jax: 0.10.0
libtpu: 0.0.40
codegen_flags: <defaults>
</compile_context>

<pallas_src>
import numpy as np

import jax
import jax.numpy as jnp
from jax import lax
from jax.experimental import pallas as pl
from jax.experimental.pallas import tpu as pltpu

EPS = 1e-8  # BatchNormConv / BatchNormDense eps in the reference module


# ------------------------------ in-kernel math ------------------------------


def _bn_relu_conv(y, gamma_t, beta_t, sel, nhw):
    """Per-channel batch-norm (+ReLU) for a (N*H, W*C) lane-dense activation.

    lanes are (w, c) interleaved; `sel[l, l'] = 1 iff channel(l) == channel(l')`
    so one matmul on the (idle) MXU both reduces over the w-groups and spreads
    the per-channel statistic back across all lanes.  Two-pass mean/var, torch
    unbiased (n-1) semantics.
    """
    mean_t = jnp.sum(jnp.dot(y, sel, preferred_element_type=jnp.float32),
                     axis=0, keepdims=True) * (1.0 / nhw)
    d = y - mean_t
    var_t = jnp.sum(jnp.dot(d * d, sel, preferred_element_type=jnp.float32),
                    axis=0, keepdims=True) * (1.0 / (nhw - 1.0))
    out = gamma_t * (d * lax.rsqrt(var_t + EPS)) + beta_t
    return jnp.maximum(out, 0.0)


def _fused_forward_kernel(
    x_ref,
    w1_ref, b1_ref, g1_ref, be1_ref, sel1_ref,
    w2_ref, b2_ref, g2_ref, be2_ref, sel2_ref,
    fw1_ref, fb1_ref, gd_ref, bd_ref, fw2_ref, fb2_ref,
    o_ref,
    pad1_ref, pad2_ref,
):
    n, cin, h, w = x_ref.shape
    wpad1 = pad1_ref.shape[2] // cin
    c1 = b1_ref.shape[1] // w
    c2 = b2_ref.shape[1] // w
    wpad2 = pad2_ref.shape[2] // c1
    rows = n * h
    nhw = float(n * h * w)

    # ---------------- conv1: NCHW -> planar-lane halo buffer -> 3 Toeplitz matmuls
    # pad1 lane layout: lane = c*wpad1 + wp (cin*wpad1 = 128 -> lane-dense rows).
    # Full memset is required for correctness (halo columns + zero-weight columns
    # must be finite zeros); at ~18 KiB it is only a handful of full-width stores.
    pad1_ref[...] = jnp.zeros_like(pad1_ref)
    for c in range(cin):  # 4 small channel-plane copies; no transpose anywhere.
        pad1_ref[:, 1:h + 1, c * wpad1 + 1:c * wpad1 + 1 + w] = (
            x_ref[:, c:c + 1, :, :].reshape(n, h, w))

    a = None
    for kh in range(3):  # kh -> sublane shift of the slab; kw folded into the weight
        lhs = pad1_ref[:, kh:kh + h, :].reshape(rows, cin * wpad1)
        t = jnp.dot(lhs, w1_ref[kh], preferred_element_type=jnp.float32)
        a = t if a is None else a + t
    a = a + b1_ref[...]
    a = _bn_relu_conv(a, g1_ref[...], be1_ref[...], sel1_ref[...], nhw)  # (rows, w*c1)

    # ---------------- conv2: interleaved-lane halo buffer (lane = wp*c1 + c)
    # halo-only zeroing: the interior is fully overwritten by one 128-lane store.
    pad2_ref[:, 0:1, :] = jnp.zeros((n, 1, wpad2 * c1), jnp.float32)
    pad2_ref[:, h + 1:h + 2, :] = jnp.zeros((n, 1, wpad2 * c1), jnp.float32)
    pad2_ref[:, 1:h + 1, 0:c1] = jnp.zeros((n, h, c1), jnp.float32)
    pad2_ref[:, 1:h + 1, (w + 1) * c1:(w + 2) * c1] = jnp.zeros((n, h, c1), jnp.float32)
    pad2_ref[:, 1:h + 1, c1:(w + 1) * c1] = a.reshape(n, h, w * c1)

    a2 = None
    for kh in range(3):
        lhs = pad2_ref[:, kh:kh + h, :].reshape(rows, wpad2 * c1)
        t = jnp.dot(lhs, w2_ref[kh], preferred_element_type=jnp.float32)
        a2 = t if a2 is None else a2 + t
    a2 = a2 + b2_ref[...]
    a2 = _bn_relu_conv(a2, g2_ref[...], be2_ref[...], sel2_ref[...], nhw)  # (rows, w*c2)

    # ---------------- dense head --------------------------------------------------
    # a2 is lane-dense (32, 128); the PyTorch NCHW flatten ordering is folded into
    # the fc1 weight rows, so this is just a small in-VMEM relayout to (2, 2048).
    xf = a2.reshape(n, h * w * c2)
    h1 = lax.dot_general(xf, fw1_ref[...], (((1,), (1,)), ((), ())),
                         preferred_element_type=jnp.float32) + fb1_ref[...]
    # BatchNormDense: batch statistics, unbiased variance (n-1), two-pass.
    mu = jnp.sum(h1, axis=0, keepdims=True) * (1.0 / n)
    d = h1 - mu
    var = jnp.sum(d * d, axis=0, keepdims=True) * (1.0 / (n - 1))
    h1 = jnp.maximum(gd_ref[...] * (d * lax.rsqrt(var + EPS)) + bd_ref[...], 0.0)
    # Final Linear, no ReLU.  out dim 10 < 128 lanes -> tiny masked store (accepted).
    o_ref[...] = lax.dot_general(h1, fw2_ref[...], (((1,), (1,)), ((), ())),
                                 preferred_element_type=jnp.float32) + fb2_ref[...]


# ------------------------------ pallas wrapper -------------------------------


def _fused_forward(x_nchw, p):
    n, cin, h, w = x_nchw.shape
    c1 = p["b1_t"].shape[1] // w
    out = p["fb2"].shape[1]
    wpad1 = p["w1k"].shape[1] // cin
    k2 = p["w2k"].shape[1]  # (w + 2) * c1
    vmem = pl.BlockSpec(memory_space=pltpu.MemorySpace.VMEM)
    return pl.pallas_call(
        _fused_forward_kernel,
        out_shape=jax.ShapeDtypeStruct((n, out), jnp.float32),
        in_specs=[vmem] * 17,
        out_specs=vmem,
        scratch_shapes=[
            pltpu.VMEM((n, h + 2, cin * wpad1), jnp.float32),  # pad1: ~18 KiB
            pltpu.VMEM((n, h + 2, k2), jnp.float32),           # pad2: ~21 KiB
        ],
    )(
        x_nchw,
        p["w1k"], p["b1_t"], p["g1_t"], p["be1_t"], p["sel1"],
        p["w2k"], p["b2_t"], p["g2_t"], p["be2_t"], p["sel2"],
        p["fw1"], p["fb1"], p["gd"], p["bd"], p["fw2"], p["fb2"],
    )


@jax.jit
def conv_dense_nn(x_nchw, params):
    # NCHW goes straight into the kernel: the NCHW->lane-layout conversion is
    # folded into conv1's packed Toeplitz weight (no transpose op anywhere).
    return _fused_forward(x_nchw.astype(jnp.float32), params)


# --------------------------------- params -----------------------------------


def pack_params(raw, *, cin, c1, c2, hw, hidden, out):
    """Host-side packing: conv weights -> per-kh Toeplitz matrices that absorb
    the kw shifts, horizontal zero padding and (for conv1) the NCHW input layout;
    fc1 weight -> NCHW-flatten-compatible rows, kept lane-dense as (hidden, fin)."""
    del out
    W = hw
    wpad1 = max(W + 2, 128 // cin)   # cin*wpad1 = 128 -> lane-dense pad1 rows
    wpad2 = W + 2                    # c1*wpad2 = 144  -> pad2 rows (no extra right-pad)

    w1 = np.asarray(raw["w1"], np.float32)  # torch OIHW (c1, cin, 3, 3)
    w1k = np.zeros((3, cin * wpad1, W * c1), np.float32)
    for kh in range(3):
        for kw in range(3):
            for c in range(cin):
                for iw in range(W):
                    # pad1 lane = c*wpad1 + wp (planar), wp = iw + kw
                    w1k[kh, c * wpad1 + iw + kw, iw * c1:(iw + 1) * c1] = w1[:, c, kh, kw]

    w2 = np.asarray(raw["w2"], np.float32)  # (c2, c1, 3, 3)
    w2k = np.zeros((3, wpad2 * c1, W * c2), np.float32)
    for kh in range(3):
        for kw in range(3):
            for c in range(c1):
                for iw in range(W):
                    # pad2 lane = wp*c1 + c (interleaved), wp = iw + kw
                    w2k[kh, (iw + kw) * c1 + c, iw * c2:(iw + 1) * c2] = w2[:, c, kh, kw]

    def lane_tile(v, reps):  # per-channel vector -> (1, W*C) lane pattern w*C + c
        return np.tile(np.asarray(v, np.float32), reps)[None, :]

    lanes1 = np.arange(W * c1)
    sel1 = (lanes1[:, None] % c1 == lanes1[None, :] % c1).astype(np.float32)
    lanes2 = np.arange(W * c2)
    sel2 = (lanes2[:, None] % c2 == lanes2[None, :] % c2).astype(np.float32)

    # Fold the PyTorch view(N,-1)-on-NCHW flatten into the fc1 weight rows and keep
    # the weight lane-dense as (hidden, H*W*C2).
    fw1 = np.asarray(raw["fw1"], np.float32).reshape(hidden, c2, hw, hw)
    fw1 = fw1.transpose(0, 2, 3, 1).reshape(hidden, hw * hw * c2)

    p = dict(
        w1k=w1k, b1_t=lane_tile(raw["b1"], W), g1_t=lane_tile(raw["g1"], W),
        be1_t=lane_tile(raw["be1"], W), sel1=sel1,
        w2k=w2k, b2_t=lane_tile(raw["b2"], W), g2_t=lane_tile(raw["g2"], W),
        be2_t=lane_tile(raw["be2"], W), sel2=sel2,
        fw1=fw1,
        fb1=np.asarray(raw["fb1"], np.float32)[None, :],
        gd=np.asarray(raw["gd"], np.float32)[None, :],
        bd=np.asarray(raw["bd"], np.float32)[None, :],
        fw2=np.asarray(raw["fw2"], np.float32),
        fb2=np.asarray(raw["fb2"], np.float32)[None, :],
    )
    return {k: jnp.asarray(v) for k, v in p.items()}


def init_params(key, *, cin=4, c1=8, c2=8, hw=16, hidden=32, out=10):
    ks = jax.random.split(key, 6)
    raw = dict(
        w1=0.1 * jax.random.normal(ks[0], (c1, cin, 3, 3), jnp.float32),
        b1=0.1 * jax.random.normal(ks[1], (c1,), jnp.float32),
        g1=jnp.ones((c1,), jnp.float32), be1=jnp.zeros((c1,), jnp.float32),
        w2=0.1 * jax.random.normal(ks[2], (c2, c1, 3, 3), jnp.float32),
        b2=0.1 * jax.random.normal(ks[3], (c2,), jnp.float32),
        g2=jnp.ones((c2,), jnp.float32), be2=jnp.zeros((c2,), jnp.float32),
        fw1=0.05 * jax.random.normal(ks[4], (hidden, c2 * hw * hw), jnp.float32),
        fb1=jnp.zeros((hidden,), jnp.float32),
        gd=jnp.ones((hidden,), jnp.float32), bd=jnp.zeros((hidden,), jnp.float32),
        fw2=0.05 * jax.random.normal(ks[5], (out, hidden), jnp.float32),
        fb2=jnp.zeros((out,), jnp.float32),
    )
    packed = pack_params(raw, cin=cin, c1=c1, c2=c2, hw=hw, hidden=hidden, out=out)
    return packed, raw


# --------------------------- pure-JAX reference ------------------------------


def _reference_forward(x_nchw, raw):
    def conv(x, w, b):
        y = lax.conv_general_dilated(
            x, w, window_strides=(1, 1), padding=((1, 1), (1, 1)),
            dimension_numbers=("NCHW", "OIHW", "NCHW"))
        return y + b.reshape(1, -1, 1, 1)

    def bn_conv_relu(x, g, be):
        m = jnp.mean(x, axis=(0, 2, 3), keepdims=True)
        v = jnp.var(x, axis=(0, 2, 3), ddof=1, keepdims=True)
        y = g.reshape(1, -1, 1, 1) * (x - m) / jnp.sqrt(v + EPS) + be.reshape(1, -1, 1, 1)
        return jnp.maximum(y, 0.0)

    x = bn_conv_relu(conv(x_nchw, raw["w1"], raw["b1"]), raw["g1"], raw["be1"])
    x = bn_conv_relu(conv(x, raw["w2"], raw["b2"]), raw["g2"], raw["be2"])
    x = x.reshape(x.shape[0], -1)                     # NCHW flatten, as in PyTorch
    h = x @ raw["fw1"].T + raw["fb1"]
    m = jnp.mean(h, axis=0, keepdims=True)
    v = jnp.var(h, axis=0, ddof=1, keepdims=True)
    h = jnp.maximum(raw["gd"] * (h - m) / jnp.sqrt(v + EPS) + raw["bd"], 0.0)
    return h @ raw["fw2"].T + raw["fb2"]


# ----------------------------------- main ------------------------------------


if __name__ == "__main__":
    key = jax.random.PRNGKey(0)
    kx, kp = jax.random.split(key)
    x = jax.random.normal(kx, (2, 4, 16, 16), jnp.float32)  # NCHW, like PyTorch
    params, raw = init_params(kp)

    y = conv_dense_nn(x, params)
    jax.block_until_ready(y)
    assert y.shape == (2, 10), y.shape

    y_ref = _reference_forward(x, raw)
    err = float(jnp.max(jnp.abs(y - y_ref)))
    assert err < 2e-3, err
    print("KERNEL_OK")
</pallas_src>

<mosaic_0001>
module attributes {stable_mosaic.version = 11 : i64} {
  func.func @_fused_forward_kernel(%arg0: memref<2x4x16x16xf32, #tpu.memory_space<vmem>>, %arg1: memref<3x128x128xf32, #tpu.memory_space<vmem>>, %arg2: memref<1x128xf32, #tpu.memory_space<vmem>>, %arg3: memref<1x128xf32, #tpu.memory_space<vmem>>, %arg4: memref<1x128xf32, #tpu.memory_space<vmem>>, %arg5: memref<128x128xf32, #tpu.memory_space<vmem>>, %arg6: memref<3x144x128xf32, #tpu.memory_space<vmem>>, %arg7: memref<1x128xf32, #tpu.memory_space<vmem>>, %arg8: memref<1x128xf32, #tpu.memory_space<vmem>>, %arg9: memref<1x128xf32, #tpu.memory_space<vmem>>, %arg10: memref<128x128xf32, #tpu.memory_space<vmem>>, %arg11: memref<32x2048xf32, #tpu.memory_space<vmem>>, %arg12: memref<1x32xf32, #tpu.memory_space<vmem>>, %arg13: memref<1x32xf32, #tpu.memory_space<vmem>>, %arg14: memref<1x32xf32, #tpu.memory_space<vmem>>, %arg15: memref<10x32xf32, #tpu.memory_space<vmem>>, %arg16: memref<1x10xf32, #tpu.memory_space<vmem>>, %arg17: memref<2x10xf32, #tpu.memory_space<vmem>>, %arg18: memref<2x18x128xf32, #tpu.memory_space<vmem>>, %arg19: memref<2x18x144xf32, #tpu.memory_space<vmem>>) attributes {dimension_semantics = [], scalar_prefetch = 0 : i64, scratch_operands = 2 : i64, tpu.core_type = #tpu.core_type<tc>} {
    %cst = arith.constant 0.000000e+00 : f32
    %0 = vector.broadcast %cst : f32 to vector<2x18x128xf32>
    %c0 = arith.constant 0 : index
    %c0_0 = arith.constant 0 : index
    %c0_1 = arith.constant 0 : index
    %1 = vector.load %arg18[%c0, %c0_0, %c0_1] : memref<2x18x128xf32, #tpu.memory_space<vmem>>, vector<2x18x128xf32>
    tpu.vector_store %arg18[%c0, %c0_0, %c0_1], %0 {strides = array<i32>} : memref<2x18x128xf32, #tpu.memory_space<vmem>>, vector<2x18x128xf32>,
    %c0_2 = arith.constant 0 : index
    %c0_3 = arith.constant 0 : index
    %c0_4 = arith.constant 0 : index
    %c0_5 = arith.constant 0 : index
    %2 = vector.load %arg0[%c0_2, %c0_3, %c0_4, %c0_5] : memref<2x4x16x16xf32, #tpu.memory_space<vmem>>, vector<2x1x16x16xf32>
    %3 = vector.shape_cast %2 : vector<2x1x16x16xf32> to vector<2x16x16xf32>
    %c0_6 = arith.constant 0 : index
    %c1 = arith.constant 1 : index
    %c1_7 = arith.constant 1 : index
    %4 = vector.load %arg18[%c0_6, %c1, %c1_7] : memref<2x18x128xf32, #tpu.memory_space<vmem>>, vector<2x16x16xf32>
    tpu.vector_store %arg18[%c0_6, %c1, %c1_7], %3 {strides = array<i32>} : memref<2x18x128xf32, #tpu.memory_space<vmem>>, vector<2x16x16xf32>,
    %c0_8 = arith.constant 0 : index
    %c1_9 = arith.constant 1 : index
    %c0_10 = arith.constant 0 : index
    %c0_11 = arith.constant 0 : index
    %5 = vector.load %arg0[%c0_8, %c1_9, %c0_10, %c0_11] : memref<2x4x16x16xf32, #tpu.memory_space<vmem>>, vector<2x1x16x16xf32>
    %6 = vector.shape_cast %5 : vector<2x1x16x16xf32> to vector<2x16x16xf32>
    %c0_12 = arith.constant 0 : index
    %c1_13 = arith.constant 1 : index
    %c33 = arith.constant 33 : index
    %7 = vector.load %arg18[%c0_12, %c1_13, %c33] : memref<2x18x128xf32, #tpu.memory_space<vmem>>, vector<2x16x16xf32>
    tpu.vector_store %arg18[%c0_12, %c1_13, %c33], %6 {strides = array<i32>} : memref<2x18x128xf32, #tpu.memory_space<vmem>>, vector<2x16x16xf32>,
    %c0_14 = arith.constant 0 : index
    %c2 = arith.constant 2 : index
    %c0_15 = arith.constant 0 : index
    %c0_16 = arith.constant 0 : index
    %8 = vector.load %arg0[%c0_14, %c2, %c0_15, %c0_16] : memref<2x4x16x16xf32, #tpu.memory_space<vmem>>, vector<2x1x16x16xf32>
    %9 = vector.shape_cast %8 : vector<2x1x16x16xf32> to vector<2x16x16xf32>
    %c0_17 = arith.constant 0 : index
    %c1_18 = arith.constant 1 : index
    %c65 = arith.constant 65 : index
    %10 = vector.load %arg18[%c0_17, %c1_18, %c65] : memref<2x18x128xf32, #tpu.memory_space<vmem>>, vector<2x16x16xf32>
    tpu.vector_store %arg18[%c0_17, %c1_18, %c65], %9 {strides = array<i32>} : memref<2x18x128xf32, #tpu.memory_space<vmem>>, vector<2x16x16xf32>,
    %c0_19 = arith.constant 0 : index
    %c3 = arith.constant 3 : index
    %c0_20 = arith.constant 0 : index
    %c0_21 = arith.constant 0 : index
    %11 = vector.load %arg0[%c0_19, %c3, %c0_20, %c0_21] : memref<2x4x16x16xf32, #tpu.memory_space<vmem>>, vector<2x1x16x16xf32>
    %12 = vector.shape_cast %11 : vector<2x1x16x16xf32> to vector<2x16x16xf32>
    %c0_22 = arith.constant 0 : index
    %c1_23 = arith.constant 1 : index
    %c97 = arith.constant 97 : index
    %13 = vector.load %arg18[%c0_22, %c1_23, %c97] : memref<2x18x128xf32, #tpu.memory_space<vmem>>, vector<2x16x16xf32>
    tpu.vector_store %arg18[%c0_22, %c1_23, %c97], %12 {strides = array<i32>} : memref<2x18x128xf32, #tpu.memory_space<vmem>>, vector<2x16x16xf32>,
    %c0_24 = arith.constant 0 : index
    %c0_25 = arith.constant 0 : index
    %c0_26 = arith.constant 0 : index
    %14 = vector.load %arg18[%c0_24, %c0_25, %c0_26] : memref<2x18x128xf32, #tpu.memory_space<vmem>>, vector<2x16x128xf32>
    %15 = vector.shape_cast %14 : vector<2x16x128xf32> to vector<32x128xf32>
    %c0_27 = arith.constant 0 : index
    %c0_28 = arith.constant 0 : index
    %c0_29 = arith.constant 0 : index
    %16 = vector.load %arg1[%c0_27, %c0_28, %c0_29] : memref<3x128x128xf32, #tpu.memory_space<vmem>>, vector<1x128x128xf32>
    %17 = vector.shape_cast %16 : vector<1x128x128xf32> to vector<128x128xf32>
    %cst_30 = arith.constant dense<0.000000e+00> : vector<32x128xf32>
    %18 = tpu.matmul %15, %17, %cst_30 {dimension_numbers = #tpu.dot_dimension_numbers<[1], [0], [0], [1], [0, 0, 1, 1], [], []>} : vector<32x128xf32>, vector<128x128xf32>, vector<32x128xf32> -> vector<32x128xf32>
    %c0_31 = arith.constant 0 : index
    %c1_32 = arith.constant 1 : index
    %c0_33 = arith.constant 0 : index
    %19 = vector.load %arg18[%c0_31, %c1_32, %c0_33] : memref<2x18x128xf32, #tpu.memory_space<vmem>>, vector<2x16x128xf32>
    %20 = vector.shape_cast %19 : vector<2x16x128xf32> to vector<32x128xf32>
    %c1_34 = arith.constant 1 : index
    %c0_35 = arith.constant 0 : index
    %c0_36 = arith.constant 0 : index
    %21 = vector.load %arg1[%c1_34, %c0_35, %c0_36] : memref<3x128x128xf32, #tpu.memory_space<vmem>>, vector<1x128x128xf32>
    %22 = vector.shape_cast %21 : vector<1x128x128xf32> to vector<128x128xf32>
    %cst_37 = arith.constant dense<0.000000e+00> : vector<32x128xf32>
    %23 = tpu.matmul %20, %22, %cst_37 {dimension_numbers = #tpu.dot_dimension_numbers<[1], [0], [0], [1], [0, 0, 1, 1], [], []>} : vector<32x128xf32>, vector<128x128xf32>, vector<32x128xf32> -> vector<32x128xf32>
    %24 = arith.addf %18, %23 : vector<32x128xf32>
    %c0_38 = arith.constant 0 : index
    %c2_39 = arith.constant 2 : index
    %c0_40 = arith.constant 0 : index
    %25 = vector.load %arg18[%c0_38, %c2_39, %c0_40] : memref<2x18x128xf32, #tpu.memory_space<vmem>>, vector<2x16x128xf32>
    %26 = vector.shape_cast %25 : vector<2x16x128xf32> to vector<32x128xf32>
    %c2_41 = arith.constant 2 : index
    %c0_42 = arith.constant 0 : index
    %c0_43 = arith.constant 0 : index
    %27 = vector.load %arg1[%c2_41, %c0_42, %c0_43] : memref<3x128x128xf32, #tpu.memory_space<vmem>>, vector<1x128x128xf32>
    %28 = vector.shape_cast %27 : vector<1x128x128xf32> to vector<128x128xf32>
    %cst_44 = arith.constant dense<0.000000e+00> : vector<32x128xf32>
    %29 = tpu.matmul %26, %28, %cst_44 {dimension_numbers = #tpu.dot_dimension_numbers<[1], [0], [0], [1], [0, 0, 1, 1], [], []>} : vector<32x128xf32>, vector<128x128xf32>, vector<32x128xf32> -> vector<32x128xf32>
    %30 = arith.addf %24, %29 : vector<32x128xf32>
    %c0_45 = arith.constant 0 : index
    %c0_46 = arith.constant 0 : index
    %31 = vector.load %arg2[%c0_45, %c0_46] : memref<1x128xf32, #tpu.memory_space<vmem>>, vector<1x128xf32>
    %32 = vector.broadcast %31 : vector<1x128xf32> to vector<32x128xf32>
    %33 = arith.addf %30, %32 : vector<32x128xf32>
    %c0_47 = arith.constant 0 : index
    %c0_48 = arith.constant 0 : index
    %34 = vector.load %arg3[%c0_47, %c0_48] : memref<1x128xf32, #tpu.memory_space<vmem>>, vector<1x128xf32>
    %c0_49 = arith.constant 0 : index
    %c0_50 = arith.constant 0 : index
    %35 = vector.load %arg4[%c0_49, %c0_50] : memref<1x128xf32, #tpu.memory_space<vmem>>, vector<1x128xf32>
    %c0_51 = arith.constant 0 : index
    %c0_52 = arith.constant 0 : index
    %36 = vector.load %arg5[%c0_51, %c0_52] : memref<128x128xf32, #tpu.memory_space<vmem>>, vector<128x128xf32>
    %cst_53 = arith.constant dense<0.000000e+00> : vector<32x128xf32>
    %37 = tpu.matmul %33, %36, %cst_53 {dimension_numbers = #tpu.dot_dimension_numbers<[1], [0], [0], [1], [0, 0, 1, 1], [], []>} : vector<32x128xf32>, vector<128x128xf32>, vector<32x128xf32> -> vector<32x128xf32>
    %cst_54 = arith.constant dense<0.000000e+00> : vector<128xf32>
    %38 = vector.multi_reduction <add>, %37, %cst_54 [0] : vector<32x128xf32> to vector<128xf32>
    %39 = vector.shape_cast %38 : vector<128xf32> to vector<1x128xf32>
    %cst_55 = arith.constant 0.001953125 : f32
    %40 = vector.broadcast %cst_55 : f32 to vector<1x128xf32>
    %41 = arith.mulf %39, %40 : vector<1x128xf32>
    %42 = vector.broadcast %41 : vector<1x128xf32> to vector<32x128xf32>
    %43 = arith.subf %33, %42 : vector<32x128xf32>
    %44 = arith.mulf %43, %43 : vector<32x128xf32>
    %cst_56 = arith.constant dense<0.000000e+00> : vector<32x128xf32>
    %45 = tpu.matmul %44, %36, %cst_56 {dimension_numbers = #tpu.dot_dimension_numbers<[1], [0], [0], [1], [0, 0, 1, 1], [], []>} : vector<32x128xf32>, vector<128x128xf32>, vector<32x128xf32> -> vector<32x128xf32>
    %cst_57 = arith.constant dense<0.000000e+00> : vector<128xf32>
    %46 = vector.multi_reduction <add>, %45, %cst_57 [0] : vector<32x128xf32> to vector<128xf32>
    %47 = vector.shape_cast %46 : vector<128xf32> to vector<1x128xf32>
    %cst_58 = arith.constant 0.00195694715 : f32
    %48 = vector.broadcast %cst_58 : f32 to vector<1x128xf32>
    %49 = arith.mulf %47, %48 : vector<1x128xf32>
    %cst_59 = arith.constant 9.99999993E-9 : f32
    %50 = vector.broadcast %cst_59 : f32 to vector<1x128xf32>
    %51 = arith.addf %49, %50 : vector<1x128xf32>
    %52 = math.rsqrt %51 : vector<1x128xf32>
    %53 = vector.broadcast %52 : vector<1x128xf32> to vector<32x128xf32>
    %54 = arith.mulf %43, %53 : vector<32x128xf32>
    %55 = vector.broadcast %34 : vector<1x128xf32> to vector<32x128xf32>
    %56 = arith.mulf %55, %54 : vector<32x128xf32>
    %57 = vector.broadcast %35 : vector<1x128xf32> to vector<32x128xf32>
    %58 = arith.addf %56, %57 : vector<32x128xf32>
    %cst_60 = arith.constant 0.000000e+00 : f32
    %59 = vector.broadcast %cst_60 : f32 to vector<32x128xf32>
    %60 = arith.maximumf %58, %59 : vector<32x128xf32>
    %cst_61 = arith.constant 0.000000e+00 : f32
    %61 = vector.broadcast %cst_61 : f32 to vector<2x1x144xf32>
    %c0_62 = arith.constant 0 : index
    %c0_63 = arith.constant 0 : index
    %c0_64 = arith.constant 0 : index
    %62 = vector.load %arg19[%c0_62, %c0_63, %c0_64] : memref<2x18x144xf32, #tpu.memory_space<vmem>>, vector<2x1x144xf32>
    tpu.vector_store %arg19[%c0_62, %c0_63, %c0_64], %61 {strides = array<i32>} : memref<2x18x144xf32, #tpu.memory_space<vmem>>, vector<2x1x144xf32>,
    %cst_65 = arith.constant 0.000000e+00 : f32
    %63 = vector.broadcast %cst_65 : f32 to vector<2x1x144xf32>
    %c0_66 = arith.constant 0 : index
    %c17 = arith.constant 17 : index
    %c0_67 = arith.constant 0 : index
    %64 = vector.load %arg19[%c0_66, %c17, %c0_67] : memref<2x18x144xf32, #tpu.memory_space<vmem>>, vector<2x1x144xf32>
    tpu.vector_store %arg19[%c0_66, %c17, %c0_67], %63 {strides = array<i32>} : memref<2x18x144xf32, #tpu.memory_space<vmem>>, vector<2x1x144xf32>,
    %cst_68 = arith.constant 0.000000e+00 : f32
    %65 = vector.broadcast %cst_68 : f32 to vector<2x16x8xf32>
    %c0_69 = arith.constant 0 : index
    %c1_70 = arith.constant 1 : index
    %c0_71 = arith.constant 0 : index
    %66 = vector.load %arg19[%c0_69, %c1_70, %c0_71] : memref<2x18x144xf32, #tpu.memory_space<vmem>>, vector<2x16x8xf32>
    tpu.vector_store %arg19[%c0_69, %c1_70, %c0_71], %65 {strides = array<i32>} : memref<2x18x144xf32, #tpu.memory_space<vmem>>, vector<2x16x8xf32>,
    %cst_72 = arith.constant 0.000000e+00 : f32
    %67 = vector.broadcast %cst_72 : f32 to vector<2x16x8xf32>
    %c0_73 = arith.constant 0 : index
    %c1_74 = arith.constant 1 : index
    %c136 = arith.constant 136 : index
    %68 = vector.load %arg19[%c0_73, %c1_74, %c136] : memref<2x18x144xf32, #tpu.memory_space<vmem>>, vector<2x16x8xf32>
    tpu.vector_store %arg19[%c0_73, %c1_74, %c136], %67 {strides = array<i32>} : memref<2x18x144xf32, #tpu.memory_space<vmem>>, vector<2x16x8xf32>,
    %69 = vector.shape_cast %60 : vector<32x128xf32> to vector<2x16x128xf32>
    %c0_75 = arith.constant 0 : index
    %c1_76 = arith.constant 1 : index
    %c8 = arith.constant 8 : index
    %70 = vector.load %arg19[%c0_75, %c1_76, %c8] : memref<2x18x144xf32, #tpu.memory_space<vmem>>, vector<2x16x128xf32>
    tpu.vector_store %arg19[%c0_75, %c1_76, %c8], %69 {strides = array<i32>} : memref<2x18x144xf32, #tpu.memory_space<vmem>>, vector<2x16x128xf32>,
    %c0_77 = arith.constant 0 : index
    %c0_78 = arith.constant 0 : index
    %c0_79 = arith.constant 0 : index
    %71 = vector.load %arg19[%c0_77, %c0_78, %c0_79] : memref<2x18x144xf32, #tpu.memory_space<vmem>>, vector<2x16x144xf32>
    %72 = vector.shape_cast %71 : vector<2x16x144xf32> to vector<32x144xf32>
    %c0_80 = arith.constant 0 : index
    %c0_81 = arith.constant 0 : index
    %c0_82 = arith.constant 0 : index
    %73 = vector.load %arg6[%c0_80, %c0_81, %c0_82] : memref<3x144x128xf32, #tpu.memory_space<vmem>>, vector<1x144x128xf32>
    %74 = vector.shape_cast %73 : vector<1x144x128xf32> to vector<144x128xf32>
    %cst_83 = arith.constant dense<0.000000e+00> : vector<32x128xf32>
    %75 = tpu.matmul %72, %74, %cst_83 {dimension_numbers = #tpu.dot_dimension_numbers<[1], [0], [0], [1], [0, 0, 1, 1], [], []>} : vector<32x144xf32>, vector<144x128xf32>, vector<32x128xf32> -> vector<32x128xf32>
    %c0_84 = arith.constant 0 : index
    %c1_85 = arith.constant 1 : index
    %c0_86 = arith.constant 0 : index
    %76 = vector.load %arg19[%c0_84, %c1_85, %c0_86] : memref<2x18x144xf32, #tpu.memory_space<vmem>>, vector<2x16x144xf32>
    %77 = vector.shape_cast %76 : vector<2x16x144xf32> to vector<32x144xf32>
    %c1_87 = arith.constant 1 : index
    %c0_88 = arith.constant 0 : index
    %c0_89 = arith.constant 0 : index
    %78 = vector.load %arg6[%c1_87, %c0_88, %c0_89] : memref<3x144x128xf32, #tpu.memory_space<vmem>>, vector<1x144x128xf32>
    %79 = vector.shape_cast %78 : vector<1x144x128xf32> to vector<144x128xf32>
    %cst_90 = arith.constant dense<0.000000e+00> : vector<32x128xf32>
    %80 = tpu.matmul %77, %79, %cst_90 {dimension_numbers = #tpu.dot_dimension_numbers<[1], [0], [0], [1], [0, 0, 1, 1], [], []>} : vector<32x144xf32>, vector<144x128xf32>, vector<32x128xf32> -> vector<32x128xf32>
    %81 = arith.addf %75, %80 : vector<32x128xf32>
    %c0_91 = arith.constant 0 : index
    %c2_92 = arith.constant 2 : index
    %c0_93 = arith.constant 0 : index
    %82 = vector.load %arg19[%c0_91, %c2_92, %c0_93] : memref<2x18x144xf32, #tpu.memory_space<vmem>>, vector<2x16x144xf32>
    %83 = vector.shape_cast %82 : vector<2x16x144xf32> to vector<32x144xf32>
    %c2_94 = arith.constant 2 : index
    %c0_95 = arith.constant 0 : index
    %c0_96 = arith.constant 0 : index
    %84 = vector.load %arg6[%c2_94, %c0_95, %c0_96] : memref<3x144x128xf32, #tpu.memory_space<vmem>>, vector<1x144x128xf32>
    %85 = vector.shape_cast %84 : vector<1x144x128xf32> to vector<144x128xf32>
    %cst_97 = arith.constant dense<0.000000e+00> : vector<32x128xf32>
    %86 = tpu.matmul %83, %85, %cst_97 {dimension_numbers = #tpu.dot_dimension_numbers<[1], [0], [0], [1], [0, 0, 1, 1], [], []>} : vector<32x144xf32>, vector<144x128xf32>, vector<32x128xf32> -> vector<32x128xf32>
    %87 = arith.addf %81, %86 : vector<32x128xf32>
    %c0_98 = arith.constant 0 : index
    %c0_99 = arith.constant 0 : index
    %88 = vector.load %arg7[%c0_98, %c0_99] : memref<1x128xf32, #tpu.memory_space<vmem>>, vector<1x128xf32>
    %89 = vector.broadcast %88 : vector<1x128xf32> to vector<32x128xf32>
    %90 = arith.addf %87, %89 : vector<32x128xf32>
    %c0_100 = arith.constant 0 : index
    %c0_101 = arith.constant 0 : index
    %91 = vector.load %arg8[%c0_100, %c0_101] : memref<1x128xf32, #tpu.memory_space<vmem>>, vector<1x128xf32>
    %c0_102 = arith.constant 0 : index
    %c0_103 = arith.constant 0 : index
    %92 = vector.load %arg9[%c0_102, %c0_103] : memref<1x128xf32, #tpu.memory_space<vmem>>, vector<1x128xf32>
    %c0_104 = arith.constant 0 : index
    %c0_105 = arith.constant 0 : index
    %93 = vector.load %arg10[%c0_104, %c0_105] : memref<128x128xf32, #tpu.memory_space<vmem>>, vector<128x128xf32>
    %cst_106 = arith.constant dense<0.000000e+00> : vector<32x128xf32>
    %94 = tpu.matmul %90, %93, %cst_106 {dimension_numbers = #tpu.dot_dimension_numbers<[1], [0], [0], [1], [0, 0, 1, 1], [], []>} : vector<32x128xf32>, vector<128x128xf32>, vector<32x128xf32> -> vector<32x128xf32>
    %cst_107 = arith.constant dense<0.000000e+00> : vector<128xf32>
    %95 = vector.multi_reduction <add>, %94, %cst_107 [0] : vector<32x128xf32> to vector<128xf32>
    %96 = vector.shape_cast %95 : vector<128xf32> to vector<1x128xf32>
    %cst_108 = arith.constant 0.001953125 : f32
    %97 = vector.broadcast %cst_108 : f32 to vector<1x128xf32>
    %98 = arith.mulf %96, %97 : vector<1x128xf32>
    %99 = vector.broadcast %98 : vector<1x128xf32> to vector<32x128xf32>
    %100 = arith.subf %90, %99 : vector<32x128xf32>
    %101 = arith.mulf %100, %100 : vector<32x128xf32>
    %cst_109 = arith.constant dense<0.000000e+00> : vector<32x128xf32>
    %102 = tpu.matmul %101, %93, %cst_109 {dimension_numbers = #tpu.dot_dimension_numbers<[1], [0], [0], [1], [0, 0, 1, 1], [], []>} : vector<32x128xf32>, vector<128x128xf32>, vector<32x128xf32> -> vector<32x128xf32>
    %cst_110 = arith.constant dense<0.000000e+00> : vector<128xf32>
    %103 = vector.multi_reduction <add>, %102, %cst_110 [0] : vector<32x128xf32> to vector<128xf32>
    %104 = vector.shape_cast %103 : vector<128xf32> to vector<1x128xf32>
    %cst_111 = arith.constant 0.00195694715 : f32
    %105 = vector.broadcast %cst_111 : f32 to vector<1x128xf32>
    %106 = arith.mulf %104, %105 : vector<1x128xf32>
    %cst_112 = arith.constant 9.99999993E-9 : f32
    %107 = vector.broadcast %cst_112 : f32 to vector<1x128xf32>
    %108 = arith.addf %106, %107 : vector<1x128xf32>
    %109 = math.rsqrt %108 : vector<1x128xf32>
    %110 = vector.broadcast %109 : vector<1x128xf32> to vector<32x128xf32>
    %111 = arith.mulf %100, %110 : vector<32x128xf32>
    %112 = vector.broadcast %91 : vector<1x128xf32> to vector<32x128xf32>
    %113 = arith.mulf %112, %111 : vector<32x128xf32>
    %114 = vector.broadcast %92 : vector<1x128xf32> to vector<32x128xf32>
    %115 = arith.addf %113, %114 : vector<32x128xf32>
    %cst_113 = arith.constant 0.000000e+00 : f32
    %116 = vector.broadcast %cst_113 : f32 to vector<32x128xf32>
    %117 = arith.maximumf %115, %116 : vector<32x128xf32>
    %118 = vector.shape_cast %117 : vector<32x128xf32> to vector<2x2048xf32>
    %c0_114 = arith.constant 0 : index
    %c0_115 = arith.constant 0 : index
    %119 = vector.load %arg11[%c0_114, %c0_115] : memref<32x2048xf32, #tpu.memory_space<vmem>>, vector<32x2048xf32>
    %cst_116 = arith.constant dense<0.000000e+00> : vector<2x32xf32>
    %120 = tpu.matmul %118, %119, %cst_116 {dimension_numbers = #tpu.dot_dimension_numbers<[1], [1], [0], [0], [0, 0, 1, 0], [], []>} : vector<2x2048xf32>, vector<32x2048xf32>, vector<2x32xf32> -> vector<2x32xf32>
    %c0_117 = arith.constant 0 : index
    %c0_118 = arith.constant 0 : index
    %121 = vector.load %arg12[%c0_117, %c0_118] : memref<1x32xf32, #tpu.memory_space<vmem>>, vector<1x32xf32>
    %122 = vector.broadcast %121 : vector<1x32xf32> to vector<2x32xf32>
    %123 = arith.addf %120, %122 : vector<2x32xf32>
    %cst_119 = arith.constant dense<0.000000e+00> : vector<32xf32>
    %124 = vector.multi_reduction <add>, %123, %cst_119 [0] : vector<2x32xf32> to vector<32xf32>
    %125 = vector.shape_cast %124 : vector<32xf32> to vector<1x32xf32>
    %cst_120 = arith.constant 5.000000e-01 : f32
    %126 = vector.broadcast %cst_120 : f32 to vector<1x32xf32>
    %127 = arith.mulf %125, %126 : vector<1x32xf32>
    %128 = vector.broadcast %127 : vector<1x32xf32> to vector<2x32xf32>
    %129 = arith.subf %123, %128 : vector<2x32xf32>
    %130 = arith.mulf %129, %129 : vector<2x32xf32>
    %cst_121 = arith.constant dense<0.000000e+00> : vector<32xf32>
    %131 = vector.multi_reduction <add>, %130, %cst_121 [0] : vector<2x32xf32> to vector<32xf32>
    %132 = vector.shape_cast %131 : vector<32xf32> to vector<1x32xf32>
    %cst_122 = arith.constant 1.000000e+00 : f32
    %133 = vector.broadcast %cst_122 : f32 to vector<1x32xf32>
    %134 = arith.mulf %132, %133 : vector<1x32xf32>
    %c0_123 = arith.constant 0 : index
    %c0_124 = arith.constant 0 : index
    %135 = vector.load %arg13[%c0_123, %c0_124] : memref<1x32xf32, #tpu.memory_space<vmem>>, vector<1x32xf32>
    %cst_125 = arith.constant 9.99999993E-9 : f32
    %136 = vector.broadcast %cst_125 : f32 to vector<1x32xf32>
    %137 = arith.addf %134, %136 : vector<1x32xf32>
    %138 = math.rsqrt %137 : vector<1x32xf32>
    %139 = vector.broadcast %138 : vector<1x32xf32> to vector<2x32xf32>
    %140 = arith.mulf %129, %139 : vector<2x32xf32>
    %141 = vector.broadcast %135 : vector<1x32xf32> to vector<2x32xf32>
    %142 = arith.mulf %141, %140 : vector<2x32xf32>
    %c0_126 = arith.constant 0 : index
    %c0_127 = arith.constant 0 : index
    %143 = vector.load %arg14[%c0_126, %c0_127] : memref<1x32xf32, #tpu.memory_space<vmem>>, vector<1x32xf32>
    %144 = vector.broadcast %143 : vector<1x32xf32> to vector<2x32xf32>
    %145 = arith.addf %142, %144 : vector<2x32xf32>
    %cst_128 = arith.constant 0.000000e+00 : f32
    %146 = vector.broadcast %cst_128 : f32 to vector<2x32xf32>
    %147 = arith.maximumf %145, %146 : vector<2x32xf32>
    %c0_129 = arith.constant 0 : index
    %c0_130 = arith.constant 0 : index
    %148 = vector.load %arg15[%c0_129, %c0_130] : memref<10x32xf32, #tpu.memory_space<vmem>>, vector<10x32xf32>
    %cst_131 = arith.constant dense<0.000000e+00> : vector<2x10xf32>
    %149 = tpu.matmul %147, %148, %cst_131 {dimension_numbers = #tpu.dot_dimension_numbers<[1], [1], [0], [0], [0, 0, 1, 0], [], []>} : vector<2x32xf32>, vector<10x32xf32>, vector<2x10xf32> -> vector<2x10xf32>
    %c0_132 = arith.constant 0 : index
    %c0_133 = arith.constant 0 : index
    %150 = vector.load %arg16[%c0_132, %c0_133] : memref<1x10xf32, #tpu.memory_space<vmem>>, vector<1x10xf32>
    %151 = vector.broadcast %150 : vector<1x10xf32> to vector<2x10xf32>
    %152 = arith.addf %149, %151 : vector<2x10xf32>
    %c0_134 = arith.constant 0 : index
    %c0_135 = arith.constant 0 : index
    %153 = vector.load %arg17[%c0_134, %c0_135] : memref<2x10xf32, #tpu.memory_space<vmem>>, vector<2x10xf32>
    tpu.vector_store %arg17[%c0_134, %c0_135], %152 {strides = array<i32>} : memref<2x10xf32, #tpu.memory_space<vmem>>, vector<2x10xf32>,
    return
  }
}

</mosaic_0001>

<bundles_post_ra>
// kernel: conv_dense_nn.1
= control target key start
LH: loop header
LB: loop body
LE: loop exit
PB: predicated region body
PF: predicated region fallthrough
CT: control target
= control target key end

     0   :  { %s4047_s0 = inlined_call_operand.hbm [shape: f32[2,4,16,16], index: 0, kind: input, shape index: {}]   ;;  %s4048_s1 = inlined_call_operand.hbm [shape: f32[3,128,128], index: 1, kind: input, shape index: {}]   ;;  %s4049_s2 = inlined_call_operand.vmem [shape: f32[1,128], index: 2, kind: input, shape index: {}]   ;;  %s4050_s3 = inlined_call_operand.vmem [shape: f32[1,128], index: 3, kind: input, shape index: {}]   ;;  %s4051_s4 = inlined_call_operand.vmem [shape: f32[1,128], index: 4, kind: input, shape index: {}]   ;;  %s4052_s5 = inlined_call_operand.hbm [shape: f32[128,128], index: 5, kind: input, shape index: {}]   ;;  %s4053_s6 = inlined_call_operand.hbm [shape: f32[3,144,128], index: 6, kind: input, shape index: {}]   ;;  %s4054_s7 = inlined_call_operand.vmem [shape: f32[1,128], index: 7, kind: input, shape index: {}]   ;;  %s4055_s8 = inlined_call_operand.vmem [shape: f32[1,128], index: 8, kind: input, shape index: {}]   ;;  %s4056_s9 = inlined_call_operand.vmem [shape: f32[1,128], index: 9, kind: input, shape index: {}]   ;;  %s4057_s10 = inlined_call_operand.hbm [shape: f32[128,128], index: 10, kind: input, shape index: {}]   ;;  %s4058_s11 = inlined_call_operand.hbm [shape: f32[32,2048], index: 11, kind: input, shape index: {}]   ;;  %s4059_s12 = inlined_call_operand.vmem [shape: f32[1,32], index: 12, kind: input, shape index: {}]   ;;  %s4060_s13 = inlined_call_operand.vmem [shape: f32[1,32], index: 13, kind: input, shape index: {}]   ;;  %s4061_s14 = inlined_call_operand.vmem [shape: f32[1,32], index: 14, kind: input, shape index: {}]   ;;  %s4062_s15 = inlined_call_operand.vmem [shape: f32[10,32], index: 15, kind: input, shape index: {}]   ;;  %s4063_s16 = inlined_call_operand.vmem [shape: f32[1,10], index: 16, kind: input, shape index: {}]   ;;  %s4064_s17 = inlined_call_operand.hbm [shape: f32[2,10], index: 17, kind: output, shape index: {}]  }
   0x1   :  { %4068 = sst [smem:[#allocation21_spill]] %s4047_s0 }
   0x2   :  { %4069 = sst [smem:[#allocation22_spill]] %s4048_s1 }
   0x3   :  { %4070 = sst [smem:[#allocation23_spill]] %s4063_s16 }
   0x4   :  { %4071 = sst [smem:[#allocation24_spill]] %s4064_s17 }
   0x5   :  { %22 = vsyncpa [#allocation5], 0 }
   0x6   :  { %23 = vsyncpa [#allocation8], 0 }
   0x7   :  { %24 = vsyncpa [#allocation11], 0 }
   0x8   :  { %25 = vsyncpa [#allocation14], 0 }
   0x9   :  { %26 = vsyncpa [#allocation6], 0  ;;  %s3518_s24 = smov [#allocation7]   ;;  %s3519_s26 = smov [#allocation10]  }
   0xa   :  { %s44_s25 = sshll.u32 %s3518_s24, 4  ;;  %s74_s27 = sshll.u32 %s3519_s26, 4  ;;  %s45_s25 = int_to_ptr.vmem [resolvable:$true] %s44_s25  ;;  %s3626_s27 = int_to_ptr.vmem [resolvable:$true] %s74_s27 }
   0xb   :  { %s4072_s0 = sld [smem:[#allocation22_spill]] }
  0x11   :  { %s3354_s30 = scalar_lea.hbm %s4072_s0, 6144 }
  0x12   :  { %p3355_p0 = scmp.ne.s32.totalorder %s4072_s0, %s3354_s30  ;;  %p3358_p1 = scmp.lt.u32.totalorder %s3354_s30, %s4072_s0 }
  0x14   :  { %p3360_p2 = pnand %p3358_p1, %p3355_p0 }
  0x16   :  { %3363 = shalt.err (!%p3360_p2)
}
  0x17   :  { %s3364_s21 = scalar_lea.vmem %s45_s25, 6144  ;;  %p3369_p4 = scmp.lt.s32.totalorder %s45_s25, %s45_s25 }
  0x18   :  { %p3365_p3 = scmp.ne.s32.totalorder %s45_s25, %s3364_s21  ;;  %p3370_p5 = scmp.lt.s32.totalorder %s3364_s21, %s3364_s21 }
  0x1a   :  { %p3371_p6 = por %p3370_p5, %p3369_p4 }
  0x1c   :  { %p3372_p7 = pnand %p3371_p6, %p3365_p3 }
  0x1e   :  { %3375 = shalt.err (!%p3372_p7)
}
  0x1f   :  { %s3520_s22 = smov 128   ;;  %s3521_s23 = smov 8  }
  0x20   :  { %50 = dma.hbm_to_vmem [thread:$0]  %s4072_s0, 6144, %s45_s25, [#allocation8], %s3520_s22, %s3520_s22, %s3521_s23  }
  0x21   :  { %s3376_s30 = scalar_lea.hbm %s4053_s6, 6912 }
  0x22   :  { %p3377_p8 = scmp.ne.s32.totalorder %s4053_s6, %s3376_s30  ;;  %p3380_p9 = scmp.lt.u32.totalorder %s3376_s30, %s4053_s6 }
  0x24   :  { %p3382_p10 = pnand %p3380_p9, %p3377_p8 }
  0x26   :  { %3385 = shalt.err (!%p3382_p10)
}
  0x27   :  { %s3386_s21 = scalar_lea.vmem %s3626_s27, 6912  ;;  %p3391_p12 = scmp.lt.s32.totalorder %s3626_s27, %s3626_s27 }
  0x28   :  { %p3387_p11 = scmp.ne.s32.totalorder %s3626_s27, %s3386_s21  ;;  %p3392_p13 = scmp.lt.s32.totalorder %s3386_s21, %s3386_s21 }
  0x2a   :  { %p3393_p0 = por %p3392_p13, %p3391_p12 }
  0x2c   :  { %p3394_p1 = pnand %p3393_p0, %p3387_p11 }
  0x2e   :  { %3397 = shalt.err (!%p3394_p1)
}
  0x2f   :  { %80 = dma.hbm_to_vmem [thread:$0]  %s4053_s6, 6912, %s3626_s27, [#allocation11], %s3520_s22, %s3520_s22, %s3521_s23  }
  0x30   :  { %s3522_s24 = smov [#allocation4]   ;;  %s3523_s28 = smov [#allocation9]  }
  0x31   :  { %s32_s26 = sshll.u32 %s3522_s24, 4  ;;  %s62_s29 = sshll.u32 %s3523_s28, 4  ;;  %s33_s26 = int_to_ptr.vmem [resolvable:$true] %s32_s26  ;;  %s3663_s29 = int_to_ptr.vmem [resolvable:$true] %s62_s29 }
  0x32   :  { %s4073_s19 = sld [smem:[#allocation21_spill]] }
  0x38   :  { %s3398_s1 = scalar_lea.hbm %s4073_s19, 2048 }
  0x39   :  { %p3399_p2 = scmp.ne.s32.totalorder %s4073_s19, %s3398_s1  ;;  %p3402_p3 = scmp.lt.u32.totalorder %s3398_s1, %s4073_s19 }
  0x3b   :  { %p3404_p4 = pnand %p3402_p3, %p3399_p2 }
  0x3d   :  { %3407 = shalt.err (!%p3404_p4)
}
  0x3e   :  { %s3408_s6 = scalar_lea.vmem %s33_s26, 2048  ;;  %p3413_p6 = scmp.lt.s32.totalorder %s33_s26, %s33_s26 }
  0x3f   :  { %p3409_p5 = scmp.ne.s32.totalorder %s33_s26, %s3408_s6  ;;  %p3414_p7 = scmp.lt.s32.totalorder %s3408_s6, %s3408_s6 }
  0x41   :  { %p3415_p8 = por %p3414_p7, %p3413_p6 }
  0x43   :  { %p3416_p9 = pnand %p3415_p8, %p3409_p5 }
  0x45   :  { %3419 = shalt.err (!%p3416_p9)
}
  0x46   :  { %38 = dma.hbm_to_vmem [thread:$0]  %s4073_s19, 2048, %s33_s26, [#allocation5], %s3520_s22, %s3520_s22, %s3521_s23  }
  0x47   :  { %s3420_s16 = scalar_lea.hbm %s4052_s5, 2048 }
  0x48   :  { %p3421_p10 = scmp.ne.s32.totalorder %s4052_s5, %s3420_s16  ;;  %p3424_p11 = scmp.lt.u32.totalorder %s3420_s16, %s4052_s5 }
  0x4a   :  { %p3426_p12 = pnand %p3424_p11, %p3421_p10 }
  0x4c   :  { %3429 = shalt.err (!%p3426_p12)
}
  0x4d   :  { %s3430_s1 = scalar_lea.vmem %s3663_s29, 2048  ;;  %p3435_p0 = scmp.lt.s32.totalorder %s3663_s29, %s3663_s29 }
  0x4e   :  { %p3431_p13 = scmp.ne.s32.totalorder %s3663_s29, %s3430_s1  ;;  %p3436_p1 = scmp.lt.s32.totalorder %s3430_s1, %s3430_s1 }
  0x50   :  { %p3437_p2 = por %p3436_p1, %p3435_p0 }
  0x52   :  { %p3438_p3 = pnand %p3437_p2, %p3431_p13 }
  0x54   :  { %3441 = shalt.err (!%p3438_p3)
}
  0x55   :  { %68 = dma.hbm_to_vmem [thread:$0]  %s4052_s5, 2048, %s3663_s29, [#allocation8], %s3520_s22, %s3520_s22, %s3521_s23  }
  0x56   :  { %s3524_s20 = smov [#allocation12]   ;;  %s3525_s6 = smov [#allocation13]  }
  0x57   :  { %s92_s21 = sshll.u32 %s3524_s20, 4  ;;  %s104_s27 = sshll.u32 %s3525_s6, 4  ;;  %s93_s21 = int_to_ptr.vmem [resolvable:$true] %s92_s21  ;;  %s3700_s27 = int_to_ptr.vmem [resolvable:$true] %s104_s27 }
  0x58   :  { %s3442_s24 = scalar_lea.hbm %s4057_s10, 2048 }
  0x59   :  { %p3443_p4 = scmp.ne.s32.totalorder %s4057_s10, %s3442_s24  ;;  %p3446_p5 = scmp.lt.u32.totalorder %s3442_s24, %s4057_s10 }
  0x5b   :  { %p3448_p6 = pnand %p3446_p5, %p3443_p4 }
  0x5d   :  { %3451 = shalt.err (!%p3448_p6)
}
  0x5e   :  { %s3452_s5 = scalar_lea.vmem %s93_s21, 2048  ;;  %p3457_p8 = scmp.lt.s32.totalorder %s93_s21, %s93_s21 }
  0x5f   :  { %p3453_p7 = scmp.ne.s32.totalorder %s93_s21, %s3452_s5  ;;  %p3458_p9 = scmp.lt.s32.totalorder %s3452_s5, %s3452_s5 }
  0x61   :  { %p3459_p10 = por %p3458_p9, %p3457_p8 }
  0x63   :  { %p3460_p11 = pnand %p3459_p10, %p3453_p7 }
  0x65   :  { %3463 = shalt.err (!%p3460_p11)
}
  0x66   :  { %98 = dma.hbm_to_vmem [thread:$0]  %s4057_s10, 2048, %s93_s21, [#allocation11], %s3520_s22, %s3520_s22, %s3521_s23  }
  0x67   :  { %s3464_s19 = scalar_lea.hbm %s4058_s11, 8192 }
  0x68   :  { %p3465_p12 = scmp.ne.s32.totalorder %s4058_s11, %s3464_s19  ;;  %p3468_p13 = scmp.lt.u32.totalorder %s3464_s19, %s4058_s11 }
  0x6a   :  { %p3470_p0 = pnand %p3468_p13, %p3465_p12 }
  0x6c   :  { %3473 = shalt.err (!%p3470_p0)
}
  0x6d   :  { %s3474_s24 = scalar_lea.vmem %s3700_s27, 8192  ;;  %p3479_p2 = scmp.lt.s32.totalorder %s3700_s27, %s3700_s27 }
  0x6e   :  { %p3475_p1 = scmp.ne.s32.totalorder %s3700_s27, %s3474_s24  ;;  %p3480_p3 = scmp.lt.s32.totalorder %s3474_s24, %s3474_s24 }
  0x70   :  { %p3481_p4 = por %p3480_p3, %p3479_p2 }
  0x72   :  { %p3482_p5 = pnand %p3481_p4, %p3475_p1 }
  0x74   :  { %3485 = shalt.err (!%p3482_p5)
}
  0x75   :  { %s3526_s10 = smov 2048  }
  0x76   :  { %110 = dma.hbm_to_vmem [thread:$0]  %s4058_s11, 8192, %s3700_s27, [#allocation14], %s3526_s10, %s3526_s10, %s3520_s22  }
  0x77   :  { %3508 = dma.done.wait [#allocation5], 2048  }
  0x78   :  { %3509 = vsyncadd [#allocation5], 4294965248 }
  0x79   :  { %3510 = dma.done.wait [#allocation8], 8192  }
  0x7a   :  { %3511 = vsyncadd [#allocation8], 4294959104 }
  0x7b   :  { %3512 = dma.done.wait [#allocation11], 8960  }
  0x7c   :  { %3513 = vsyncadd [#allocation11], 4294958336 }
  0x7d   :  { %3514 = dma.done.wait [#allocation14], 8192  }
  0x7e   :  { %3515 = vsyncadd [#allocation14], 4294959104  ;;  %v3527_v0 = vmov 0.0   ;;  %v171_v1 = vld [vmem:[#allocation4 + $0x10] sm:$0xff]  ;;  %v145_v2 = vld [vmem:[#allocation4] sm:$0xff]  ;;  %s3528_s11 = smov 33  }
  0x7f   :  { %139 = vst [vmem:[#allocation2] sm:$0xff] %v3527_v0  ;;  %140 = vst [vmem:[#allocation2 + $0x8] sm:$0xff] %v3527_v0  ;;  %179 = vrot.lane.b32.xlu1 %v171_v1, %s3528_s11  ;;  %s3529_s22 = smov 1   ;;  %v172_v3 = vld [vmem:[#allocation4 + $0x18] sm:$0xff]  ;;  %v146_v4 = vld [vmem:[#allocation4 + $0x8] sm:$0xff]  ;;  %s3530_s27 = smov 65  }
  0x80   :  { %141 = vst [vmem:[#allocation2 + $0x10] sm:$0x3] %v3527_v0  ;;  %142 = vst [vmem:[#allocation2 + $0x18] sm:$0xff] %v3527_v0  ;;  %153 = vrot.lane.b32.xlu0 %v145_v2, %s3529_s22  ;;  %v198_v5 = vld [vmem:[#allocation4 + $0x28] sm:$0xff]  ;;  %v273_v6 = vld [vmem:[#allocation7 + $0x80] sm:$0xff]  ;;  %s3531_s17 = smov 97  }
  0x81   :  { %143 = vst [vmem:[#allocation2 + $0x20] sm:$0xff] %v3527_v0  ;;  %144 = vst [vmem:[#allocation2 + $0x28] sm:$0x3] %v3527_v0  ;;  %v274_v7 = vld [vmem:[#allocation7 + $0x88] sm:$0xff]  ;;  %v197_v8 = vld [vmem:[#allocation4 + $0x20] sm:$0xff]  ;;  %vm165_vm0 = vcmask 138248  }
  0x82   :  { %v2935_v9 = vpack.c.bf16 %v274_v7, %v273_v6  ;;  %v275_v10 = vld [vmem:[#allocation7 + $0x90] sm:$0xff]  ;;  %v276_v11 = vld [vmem:[#allocation7 + $0x98] sm:$0xff]  ;;  %v277_v13 = vld [vmem:[#allocation7 + $0xa0] sm:$0xff]  ;;  %vm191_vm1 = vcmask 400648   ;;  %vm217_vm2 = vcmask 663048   ;;  %vm243_vm3 = vcmask 925448  }
  0x83   :  { %181 = vrot.lane.b32.xlu1 %v172_v3, %s3528_s11  ;;  %v2939_v12 = vpack.c.bf16 %v276_v11, %v275_v10  ;;  %v278_v14 = vld [vmem:[#allocation7 + $0xa8] sm:$0xff]  ;;  %v224_v15 = vld [vmem:[#allocation4 + $0x38] sm:$0xff]  ;;  %v223_v16 = vld [vmem:[#allocation4 + $0x30] sm:$0xff]  ;;  %vm841_vm4 = vcmask 64513   ;;  %vm850_vm5 = vcmask 130113   ;;  %vm843_vm6 = vcmask 64512  }
  0x84   :  { %155 = vrot.lane.b32.xlu0 %v146_v4, %s3529_s22  ;;  %2936 = vmatprep.subr.bf16.mxu0 %v2935_v9  ;;  %v2943_v17 = vpack.c.bf16 %v278_v14, %v277_v13  ;;  %v279_v18 = vld [vmem:[#allocation7 + $0xb0] sm:$0xff]  ;;  %v280_v19 = vld [vmem:[#allocation7 + $0xb8] sm:$0xff]  ;;  %v147_v20 = vld [vmem:[#allocation4 + $0x40] sm:$0xff]  ;;  %842 = vst.msk [vmem:[#allocation3] sm:$0xfe] %vm841_vm4, %v3527_v0  ;;  %vm852_vm7 = vcmask 130112  }
  0x85   :  { %2938 = vmatpush3.bf16.msra.mxu0 %v2935_v9  ;;  %v148_v21 = vld [vmem:[#allocation4 + $0x48] sm:$0xff]  ;;  %v2947_v22 = vpack.c.bf16 %v280_v19, %v279_v18  ;;  %v281_v23 = vld [vmem:[#allocation7 + $0xc0] sm:$0xff]  ;;  %v173_v25 = vld [vmem:[#allocation4 + $0x50] sm:$0xff]  ;;  %851 = vst.msk [vmem:[#allocation3 + $0x8] sm:$0xfe] %vm850_vm5, %v3527_v0  ;;  %vm845_vm9 = vcmask 57344  }
  0x86   :  { %2940 = vmatprep.subr.bf16.mxu0 %v2939_v12  ;;  %v282_v24 = vld [vmem:[#allocation7 + $0xc8] sm:$0xff]  ;;  %v174_v26 = vld [vmem:[#allocation4 + $0x58] sm:$0xff]  ;;  %v283_v28 = vld [vmem:[#allocation7 + $0xd0] sm:$0xff]  ;;  %847 = vst.msk [vmem:[#allocation3 + $0x30] sm:$0xfe] %vm841_vm4, %v3527_v0  ;;  %vm854_vm10 = vcmask 122944  }
  0x87   :  { %207 = vrot.lane.b32.xlu1 %v198_v5, %s3530_s27  ;;  %v2951_v27 = vpack.c.bf16 %v282_v24, %v281_v23  ;;  %v284_v29 = vld [vmem:[#allocation7 + $0xd8] sm:$0xff]  ;;  %v199_v30 = vld [vmem:[#allocation4 + $0x60] sm:$0xff]  ;;  %v200_v31 = vld [vmem:[#allocation4 + $0x68] sm:$0xff]  ;;  %856 = vst.msk [vmem:[#allocation3 + $0x38] sm:$0xfe] %vm850_vm5, %v3527_v0  ;;  %vm863_vm11 = vcmask 1040384  }
  0x88   :  { %205 = vrot.lane.b32.xlu0 %v197_v8, %s3530_s27  ;;  %v2955_v32 = vpack.c.bf16 %v284_v29, %v283_v28  ;;  %v285_v33 = vld [vmem:[#allocation7 + $0xe0] sm:$0xff]  ;;  %v286_v34 = vld [vmem:[#allocation7 + $0xe8] sm:$0xff]  ;;  %v225_v35 = vld [vmem:[#allocation4 + $0x70] sm:$0xff]  ;;  %844 = vst.msk [vmem:[#allocation3 + $0x10] sm:$0xff] %vm843_vm6, %v3527_v0  ;;  %vm888_vm12 = vcmask 1047617   ;;  %vm891_vm13 = vcmask 1047616  }
  0x89   :  { %2942 = vmatpush3.bf16.msra.mxu0 %v2939_v12  ;;  %v226_v36 = vld [vmem:[#allocation4 + $0x78] sm:$0xff]  ;;  %v2959_v37 = vpack.c.bf16 %v286_v34, %v285_v33  ;;  %v287_v38 = vld [vmem:[#allocation7 + $0xf0] sm:$0xff]  ;;  %v252_v41 = vld [vmem:[#allocation7] sm:$0xff]  ;;  %853 = vst.msk [vmem:[#allocation3 + $0x18] sm:$0xff] %vm852_vm7, %v3527_v0  ;;  %vm894_vm14 = vcmask 1040448   ;;  %vm949_vm15 = vcmask 1046528  }
  0x8a   :  { %2944 = vmatprep.subr.bf16.mxu0 %v2943_v17  ;;  %v288_v39 = vld [vmem:[#allocation7 + $0xf8] sm:$0xff]  ;;  %v253_v42 = vld [vmem:[#allocation7 + $0x8] sm:$0xff]  ;;  %v582_v44 = vld [vmem:[#allocation9] sm:$0xff]  ;;  %848 = vst.msk [vmem:[#allocation3 + $0x40] sm:$0xff] %vm843_vm6, %v3527_v0  ;;  %vm2347_vm5 = vcmask 254976   ;;  %s4074_s16 = sld [smem:[#allocation23_spill]] }
  0x8b   :  { %233 = vrot.lane.b32.xlu1 %v224_v15, %s3531_s17  ;;  %v2963_v40 = vpack.c.bf16 %v288_v39, %v287_v38  ;;  %v3757_v43 = vpack.c.bf16 %v253_v42, %v252_v41  ;;  %v583_v45 = vld [vmem:[#allocation9 + $0x8] sm:$0xff]  ;;  %v584_v46 = vld [vmem:[#allocation9 + $0x10] sm:$0xff]  ;;  %v585_v48 = vld [vmem:[#allocation9 + $0x18] sm:$0xff]  ;;  %857 = vst.msk [vmem:[#allocation3 + $0x48] sm:$0xff] %vm852_vm7, %v3527_v0 }
  0x8c   :  { %231 = vrot.lane.b32.xlu0 %v223_v16, %s3531_s17  ;;  %v3760_v47 = vpack.c.bf16 %v583_v45, %v582_v44  ;;  %v3762_v49 = vpack.c.bf16 %v585_v48, %v584_v46  ;;  %v586_v50 = vld [vmem:[#allocation9 + $0x20] sm:$0xff]  ;;  %v587_v51 = vld [vmem:[#allocation9 + $0x28] sm:$0xff]  ;;  %v588_v53 = vld [vmem:[#allocation9 + $0x30] sm:$0xff]  ;;  %846 = vst.msk [vmem:[#allocation3 + $0x20] sm:$0x1] %vm845_vm9, %v3527_v0 }
  0x8d   :  { %2946 = vmatpush3.bf16.msra.mxu0 %v2943_v17  ;;  %v3767_v52 = vpack.c.bf16 %v587_v51, %v586_v50  ;;  %v589_v54 = vld [vmem:[#allocation9 + $0x38] sm:$0xff]  ;;  %v590_v56 = vld [vmem:[#allocation9 + $0x40] sm:$0xff]  ;;  %v591_v57 = vld [vmem:[#allocation9 + $0x48] sm:$0xff]  ;;  %855 = vst.msk [vmem:[#allocation3 + $0x28] sm:$0x1] %vm854_vm10, %v3527_v0 }
  0x8e   :  { %2948 = vmatprep.subr.bf16.mxu0 %v2947_v22  ;;  %3032 = vmatprep.subr.bf16.mxu1 %v3760_v47  ;;  %v3771_v55 = vpack.c.bf16 %v589_v54, %v588_v53  ;;  %v3775_v58 = vpack.c.bf16 %v591_v57, %v590_v56  ;;  %v592_v59 = vld [vmem:[#allocation9 + $0x50] sm:$0xff]  ;;  %v593_v60 = vld [vmem:[#allocation9 + $0x58] sm:$0xff]  ;;  %v594_v62 = vld [vmem:[#allocation9 + $0x60] sm:$0xff]  ;;  %849 = vst.msk [vmem:[#allocation3 + $0x50] sm:$0x1] %vm845_vm9, %v3527_v0 }
  0x8f   :  { %159 = vrot.lane.b32.xlu1 %v148_v21, %s3529_s22  ;;  %3034 = vmatpush3.bf16.msra.mxu1 %v3760_v47  ;;  %v3779_v61 = vpack.c.bf16 %v593_v60, %v592_v59  ;;  %v595_v63 = vld [vmem:[#allocation9 + $0x68] sm:$0xff]  ;;  %v254_v12 = vld [vmem:[#allocation7 + $0x10] sm:$0xff]  ;;  %v255_v13 = vld [vmem:[#allocation7 + $0x18] sm:$0xff]  ;;  %858 = vst.msk [vmem:[#allocation3 + $0x58] sm:$0x1] %vm854_vm10, %v3527_v0 }
  0x90   :  { %157 = vrot.lane.b32.xlu0 %v147_v20, %s3529_s22  ;;  %3036 = vmatprep.subr.bf16.mxu1 %v3762_v49  ;;  %v3783_v1 = vpack.c.bf16 %v595_v63, %v594_v62  ;;  %v2971_v18 = vpack.c.bf16 %v255_v13, %v254_v12  ;;  %v256_v19 = vld [vmem:[#allocation7 + $0x20] sm:$0xff]  ;;  %v257_v20 = vld [vmem:[#allocation7 + $0x28] sm:$0xff]  ;;  %v258_v24 = vld [vmem:[#allocation7 + $0x30] sm:$0xff] }
  0x91   :  { %2950 = vmatpush3.bf16.msra.mxu0 %v2947_v22  ;;  %v2975_v23 = vpack.c.bf16 %v257_v20, %v256_v19  ;;  %v260_v29 = vld [vmem:[#allocation7 + $0x40] sm:$0xff]  ;;  %v263_v33 = vld [vmem:[#allocation7 + $0x58] sm:$0xff]  ;;  %v265_v38 = vld [vmem:[#allocation7 + $0x68] sm:$0xff] }
  0x92   :  { %2952 = vmatprep.subr.bf16.mxu0 %v2951_v27  ;;  %v266_v41 = vld [vmem:[#allocation7 + $0x70] sm:$0xff]  ;;  %v267_v42 = vld [vmem:[#allocation7 + $0x78] sm:$0xff]  ;;  %v464_v44 = vld [vmem:[#allocation7 + $0x100] sm:$0xff] }
  0x93   :  { %185 = vrot.lane.b32.xlu1 %v174_v26, %s3528_s11  ;;  %3038 = vmatpush3.bf16.msra.mxu1 %v3762_v49  ;;  %v465_v45 = vld [vmem:[#allocation7 + $0x108] sm:$0xff]  ;;  %v466_v48 = vld [vmem:[#allocation7 + $0x110] sm:$0xff]  ;;  %v467_v50 = vld [vmem:[#allocation7 + $0x118] sm:$0xff] }
  0x94   :  { %183 = vrot.lane.b32.xlu0 %v173_v25, %s3528_s11  ;;  %3040 = vmatprep.subr.bf16.mxu1 %v3767_v52  ;;  %v259_v25 = vld [vmem:[#allocation7 + $0x38] sm:$0xff]  ;;  %v2999_v46 = vpack.c.bf16 %v465_v45, %v464_v44  ;;  %v3003_v51 = vpack.c.bf16 %v467_v50, %v466_v48  ;;  %v468_v54 = vld [vmem:[#allocation7 + $0x120] sm:$0xff]  ;;  %v469_v56 = vld [vmem:[#allocation7 + $0x128] sm:$0xff]  ;;  %s3535_s11 = smov [#allocation15]  }
  0x95   :  { %2954 = vmatpush3.bf16.msra.mxu0 %v2951_v27  ;;  %v2979_v28 = vpack.c.bf16 %v259_v25, %v258_v24  ;;  %v3007_v59 = vpack.c.bf16 %v469_v56, %v468_v54  ;;  %v470_v62 = vld [vmem:[#allocation7 + $0x130] sm:$0xff]  ;;  %v471_v63 = vld [vmem:[#allocation7 + $0x138] sm:$0xff]  ;;  %v977_v50 = vld [vmem:[#allocation10 + $0xa0] sm:$0xff]  ;;  %s2482_s22 = sshll.u32 %s3535_s11, 4  ;;  %s2483_s22 = int_to_ptr.vmem [resolvable:$true] %s2482_s22 }
  0x96   :  { %2956 = vmatprep.subr.bf16.mxu0 %v2955_v32  ;;  %v478_v13 = vld [vmem:[#allocation7 + $0x170] sm:$0xff]  ;;  %v597_v20 = vld [vmem:[#allocation9 + $0x78] sm:$0xff]  ;;  %v978_v54 = vld [vmem:[#allocation10 + $0xa8] sm:$0xff]  ;;  %p3491_p7 = scmp.lt.s32.totalorder %s2483_s22, %s2483_s22 }
  0x97   :  { %211 = vrot.lane.b32.xlu1 %v200_v31, %s3530_s27  ;;  %3042 = vmatpush3.bf16.msra.mxu1 %v3767_v52  ;;  %v596_v19 = vld [vmem:[#allocation9 + $0x70] sm:$0xff]  ;;  %v976_v48 = vld [vmem:[#allocation10 + $0x98] sm:$0xff]  ;;  %v3099_v56 = vpack.c.bf16 %v978_v54, %v977_v50 }
  0x98   :  { %209 = vrot.lane.b32.xlu0 %v199_v30, %s3530_s27  ;;  %3044 = vmatprep.subr.bf16.mxu1 %v3771_v55  ;;  %v261_v30 = vld [vmem:[#allocation7 + $0x48] sm:$0xff] }
  0x99   :  { %2958 = vmatpush3.bf16.msra.mxu0 %v2955_v32  ;;  %v2983_v31 = vpack.c.bf16 %v261_v30, %v260_v29  ;;  %v262_v32 = vld [vmem:[#allocation7 + $0x50] sm:$0xff] }
  0x9a   :  { %2960 = vmatprep.subr.bf16.mxu0 %v2959_v37 }
  0x9b   :  { %237 = vrot.lane.b32.xlu1 %v226_v36, %s3531_s17  ;;  %3046 = vmatpush3.bf16.msra.mxu1 %v3771_v55  ;;  %v2987_v36 = vpack.c.bf16 %v263_v33, %v262_v32 }
  0x9c   :  { %235 = vrot.lane.b32.xlu0 %v225_v35, %s3531_s17  ;;  %3048 = vmatprep.subr.bf16.mxu1 %v3775_v58 }
  0x9d   :  { %2962 = vmatpush3.bf16.msra.mxu0 %v2959_v37  ;;  %v264_v37 = vld [vmem:[#allocation7 + $0x60] sm:$0xff] }
  0x9e   :  { %2964 = vmatprep.subr.bf16.mxu0 %v2963_v40 }
  0x9f   :  { %3050 = vmatpush3.bf16.msra.mxu1 %v3775_v58 }
  0xa0   :  { %3052 = vmatprep.subr.bf16.mxu1 %v3779_v61 }
  0xa1   :  { %2966 = vmatpush3.bf16.msra.mxu0 %v2963_v40  ;;  %v2991_v40 = vpack.c.bf16 %v265_v38, %v264_v37 }
  0xa2   :  { %2968 = vmatprep.subr.bf16.mxu0 %v3757_v43 }
  0xa3   :  { %3054 = vmatpush3.bf16.msra.mxu1 %v3779_v61 }
  0xa4   :  { %3056 = vmatprep.subr.bf16.mxu1 %v3783_v1 }
  0xa7   :  { %3058 = vmatpush3.bf16.msra.mxu1 %v3783_v1 }
  0xf1   :  { %v180_v2 = vpop.permute.xlu1 %179 }
  0xf2   :  { %v154_v3 = vpop.permute.xlu0 %153 }
  0xf3   :  { %166 = vst.msk [vmem:[#allocation2 + $0x1] sm:$0xff] %vm165_vm0, %v154_v3  ;;  %v3011_v3 = vpack.c.bf16 %v471_v63, %v470_v62  ;;  %v981_v62 = vld [vmem:[#allocation10 + $0xc0] sm:$0xff]  ;;  %v982_v63 = vld [vmem:[#allocation10 + $0xc8] sm:$0xff] }
  0xf4   :  { %192 = vst.msk [vmem:[#allocation2 + $0x1] sm:$0xff] %vm191_vm1, %v180_v2 }
  0xf5   :  { %v182_v4 = vpop.permute.xlu1 %181 }
  0xf6   :  { %v156_v5 = vpop.permute.xlu0 %155 }
  0xf7   :  { %167 = vst.msk [vmem:[#allocation2 + $0x9] sm:$0xff] %vm165_vm0, %v156_v5  ;;  %v473_v5 = vld [vmem:[#allocation7 + $0x148] sm:$0xff] }
  0xf8   :  { %193 = vst.msk [vmem:[#allocation2 + $0x9] sm:$0xff] %vm191_vm1, %v182_v4  ;;  %v472_v4 = vld [vmem:[#allocation7 + $0x140] sm:$0xff] }
  0xf9   :  { %v208_v6 = vpop.permute.xlu1 %207 }
  0xfa   :  { %v206_v7 = vpop.permute.xlu0 %205  ;;  %219 = vst.msk [vmem:[#allocation2 + $0x9] sm:$0xff] %vm217_vm2, %v208_v6  ;;  %v3015_v6 = vpack.c.bf16 %v473_v5, %v472_v4  ;;  %v984_v4 = vld [vmem:[#allocation10 + $0xd8] sm:$0xff] }
  0xfb   :  { %218 = vst.msk [vmem:[#allocation2 + $0x1] sm:$0xff] %vm217_vm2, %v206_v7  ;;  %v474_v7 = vld [vmem:[#allocation7 + $0x150] sm:$0xff] }
  0xfd   :  { %v234_v8 = vpop.permute.xlu1 %233 }
  0xfe   :  { %v232_v9 = vpop.permute.xlu0 %231  ;;  %245 = vst.msk [vmem:[#allocation2 + $0x9] sm:$0xff] %vm243_vm3, %v234_v8  ;;  %v475_v8 = vld [vmem:[#allocation7 + $0x158] sm:$0xff] }
  0xff   :  { %244 = vst.msk [vmem:[#allocation2 + $0x1] sm:$0xff] %vm243_vm3, %v232_v9  ;;  %v3019_v9 = vpack.c.bf16 %v475_v8, %v474_v7  ;;  %v986_v7 = vld [vmem:[#allocation10 + $0xe8] sm:$0xff] }
 0x101   :  { %v160_v11 = vpop.permute.xlu1 %159 }
 0x102   :  { %v158_v10 = vpop.permute.xlu0 %157  ;;  %169 = vst.msk [vmem:[#allocation2 + $0x21] sm:$0xff] %vm165_vm0, %v160_v11  ;;  %v477_v11 = vld [vmem:[#allocation7 + $0x168] sm:$0xff] }
 0x103   :  { %168 = vst.msk [vmem:[#allocation2 + $0x19] sm:$0xff] %vm165_vm0, %v158_v10  ;;  %v476_v10 = vld [vmem:[#allocation7 + $0x160] sm:$0xff]  ;;  %vm993_vm0 = vcmask 130048  }
 0x104   :  { %v3023_v12 = vpack.c.bf16 %v477_v11, %v476_v10 }
 0x105   :  { %v186_v15 = vpop.permute.xlu1 %185  ;;  %v269_v17 = vld [vmem:[#allocation2 + $0x9] sm:$0xff] }
 0x106   :  { %v184_v14 = vpop.permute.xlu0 %183  ;;  %v268_v16 = vld [vmem:[#allocation2 + $0x1] sm:$0xff]  ;;  %195 = vst.msk [vmem:[#allocation2 + $0x21] sm:$0xff] %vm191_vm1, %v186_v15 }
 0x107   :  { %194 = vst.msk [vmem:[#allocation2 + $0x19] sm:$0xff] %vm191_vm1, %v184_v14  ;;  %2694 = vmatprep.mubr.f32.mxu0 %v268_v16  ;;  %v248_v39 = vld [vmem:[#allocation2] sm:$0xff]  ;;  %v249_v53 = vld [vmem:[#allocation2 + $0x8] sm:$0xff]  ;;  %vm1198_vm1 = vcmask 1045504  }
 0x108   :  { %2695 = vmatmul.mubr.f32.vlgmr.msra.gmra.mrb[0].mxu0 %v269_v17  ;;  %v459_v2 = vld [vmem:[#allocation2 + $0x2] sm:$0xff]  ;;  %v460_v16 = vld [vmem:[#allocation2 + $0xa] sm:$0xff] }
 0x109   :  { %2970 = vmatpush3.bf16.msra.mxu0 %v3757_v43  ;;  %v212_v22 = vpop.permute.xlu1 %211  ;;  %v2995_v43 = vpack.c.bf16 %v267_v42, %v266_v41  ;;  %v479_v14 = vld [vmem:[#allocation7 + $0x178] sm:$0xff] }
 0x10a   :  { %v210_v21 = vpop.permute.xlu0 %209  ;;  %2972 = vmatprep.subr.bf16.mxu0 %v2971_v18  ;;  %221 = vst.msk [vmem:[#allocation2 + $0x21] sm:$0xff] %vm217_vm2, %v212_v22  ;;  %v3027_v15 = vpack.c.bf16 %v479_v14, %v478_v13  ;;  %v2494_v22 = vld [vmem:[%s4049_s2] ss:$0 sm:$0xff] }
 0x10b   :  { %220 = vst.msk [vmem:[#allocation2 + $0x19] sm:$0xff] %vm217_vm2, %v210_v21  ;;  %v3059_v21 = vpack.c.bf16 %v597_v20, %v596_v19  ;;  %vm2394_vm2 = vcmask 261120  }
 0x10d   :  { %2974 = vmatpush3.bf16.msra.mxu0 %v2971_v18  ;;  %v238_v27 = vpop.permute.xlu1 %237  ;;  %3060 = vmatprep.subr.bf16.mxu1 %v3059_v21 }
 0x10e   :  { %v236_v26 = vpop.permute.xlu0 %235  ;;  %2976 = vmatprep.subr.bf16.mxu0 %v2975_v23  ;;  %247 = vst.msk [vmem:[#allocation2 + $0x21] sm:$0xff] %vm243_vm3, %v238_v27  ;;  %3062 = vmatpush3.bf16.msra.mxu1 %v3059_v21 }
 0x10f   :  { %246 = vst.msk [vmem:[#allocation2 + $0x19] sm:$0xff] %vm243_vm3, %v236_v26  ;;  %3064 = vmatprep.subr.bf16.mxu1 %v3760_v47  ;;  %vm3306_vm3 = vmpackc.low %vm2394_vm2, %vm2394_vm2 }
 0x111   :  { %2978 = vmatpush3.bf16.msra.mxu0 %v2975_v23 }
 0x112   :  { %2980 = vmatprep.subr.bf16.mxu0 %v2979_v28 }
 0x115   :  { %2982 = vmatpush3.bf16.msra.mxu0 %v2979_v28  ;;  %v271_v35 = vld [vmem:[#allocation2 + $0x21] sm:$0xff] }
 0x116   :  { %v270_v34 = vld [vmem:[#allocation2 + $0x19] sm:$0xff]  ;;  %2984 = vmatprep.subr.bf16.mxu0 %v2983_v31  ;;  %v462_v18 = vld [vmem:[#allocation2 + $0x22] sm:$0xff] }
 0x117   :  { %2697 = vmatprep.mubr.f32.mxu0 %v270_v34  ;;  %v250_v57 = vld [vmem:[#allocation2 + $0x18] sm:$0xff]  ;;  %v251_v60 = vld [vmem:[#allocation2 + $0x20] sm:$0xff] }
 0x118   :  { %2698 = vmatmul.mubr.f32.gmra.mrb[2].mxu0 %v271_v35  ;;  %v461_v17 = vld [vmem:[#allocation2 + $0x1a] sm:$0xff] }
 0x119   :  { %2986 = vmatpush3.bf16.msra.mxu0 %v2983_v31  ;;  %2732 = vmatprep.mubr.f32.mxu0 %v248_v39 }
 0x11a   :  { %2988 = vmatprep.subr.bf16.mxu0 %v2987_v36 }
 0x11d   :  { %2990 = vmatpush3.bf16.msra.mxu0 %v2987_v36 }
 0x11e   :  { %2992 = vmatprep.subr.bf16.mxu0 %v2991_v40 }
 0x121   :  { %2994 = vmatpush3.bf16.msra.mxu0 %v2991_v40 }
 0x122   :  { %2996 = vmatprep.subr.bf16.mxu0 %v2995_v43 }
 0x125   :  { %2998 = vmatpush3.bf16.msra.mxu0 %v2995_v43 }
 0x126   :  { %3000 = vmatprep.subr.bf16.mxu0 %v2999_v46 }
 0x128   :  { %2733 = vmatmul.mubr.f32.vlgmr.msra.gmra.mrb[0].mxu0 %v249_v53 }
 0x129   :  { %2735 = vmatprep.mubr.f32.mxu0 %v250_v57  ;;  %3002 = vmatpush3.bf16.msra.mxu0 %v2999_v46  ;;  %v975_v46 = vld [vmem:[#allocation10 + $0x90] sm:$0xff] }
 0x12a   :  { %3004 = vmatprep.subr.bf16.mxu0 %v3003_v51  ;;  %v3096_v53 = vpack.c.bf16 %v976_v48, %v975_v46  ;;  %v979_v57 = vld [vmem:[#allocation10 + $0xb0] sm:$0xff] }
 0x12c   :  { %2736 = vmatmul.mubr.f32.gmra.mrb[2].mxu0 %v251_v60 }
 0x12d   :  { %3006 = vmatpush3.bf16.msra.mxu0 %v3003_v51  ;;  %2770 = vmatprep.mubr.f32.mxu0 %v459_v2  ;;  %v3532_v51 = vmov 0.0|0.0   ;;  %v3105_v2 = vpack.c.bf16 %v982_v63, %v981_v62  ;;  %v911_v63 = vld [vmem:[#allocation10] sm:$0xff] }
 0x12e   :  { %3008 = vmatprep.subr.bf16.mxu0 %v3007_v59 }
 0x131   :  { %3010 = vmatpush3.bf16.msra.mxu0 %v3007_v59  ;;  %v980_v59 = vld [vmem:[#allocation10 + $0xb8] sm:$0xff] }
 0x132   :  { %3012 = vmatprep.subr.bf16.mxu0 %v3011_v3  ;;  %v3102_v60 = vpack.c.bf16 %v980_v59, %v979_v57 }
 0x135   :  { %3014 = vmatpush3.bf16.msra.mxu0 %v3011_v3  ;;  %v983_v3 = vld [vmem:[#allocation10 + $0xd0] sm:$0xff] }
 0x136   :  { %3016 = vmatprep.subr.bf16.mxu0 %v3015_v6  ;;  %v3108_v5 = vpack.c.bf16 %v984_v4, %v983_v3 }
 0x139   :  { %3018 = vmatpush3.bf16.msra.mxu0 %v3015_v6  ;;  %v985_v6 = vld [vmem:[#allocation10 + $0xe0] sm:$0xff] }
 0x13a   :  { %3020 = vmatprep.subr.bf16.mxu0 %v3019_v9  ;;  %v3111_v8 = vpack.c.bf16 %v986_v7, %v985_v6 }
 0x13d   :  { %3022 = vmatpush3.bf16.msra.mxu0 %v3019_v9 }
 0x13e   :  { %3024 = vmatprep.subr.bf16.mxu0 %v3023_v12 }
 0x141   :  { %3026 = vmatpush3.bf16.msra.mxu0 %v3023_v12 }
 0x142   :  { %3028 = vmatprep.subr.bf16.mxu0 %v3027_v15 }
 0x145   :  { %3030 = vmatpush3.bf16.msra.mxu0 %v3027_v15 }
 0x148   :  { %2771 = vmatmul.mubr.f32.vlgmr.msra.gmra.mrb[0].mxu0 %v460_v16 }
 0x149   :  { %2773 = vmatprep.mubr.f32.mxu0 %v461_v17 }
 0x14c   :  { %2774 = vmatmul.mubr.f32.gmra.mrb[2].mxu0 %v462_v18 }
 0x21b   :  { %v2772_v23 = vpop.f32.mrb[0].mxu0 }
 0x21c   :  { %v546_v24 = vpop.f32.mrb[1].mxu0  ;;  %v577_v26 = vadd.f32 %v2772_v23, %v2494_v22 }
 0x21d   :  { %v576_v25 = vadd.f32 %v2494_v22, %v546_v24  ;;  %v987_v24 = vld [vmem:[#allocation10 + $0xf0] sm:$0xff] }
 0x21f   :  { %v2775_v27 = vpop.f32.mrb[2].mxu0  ;;  %2808 = vmatprep.mubr.f32.mxu1 %v576_v25 }
 0x220   :  { %v556_v28 = vpop.f32.mrb[3].mxu0  ;;  %2809 = vmatmul.mubr.f32.vlgmr.msra.gmra.mrb[0].mxu1 %v577_v26  ;;  %v579_v30 = vadd.f32 %v2775_v27, %v2494_v22 }
 0x221   :  { %v578_v29 = vadd.f32 %v2494_v22, %v556_v28  ;;  %3066 = vmatpush3.bf16.msra.mxu1 %v3760_v47 }
 0x222   :  { %3068 = vmatprep.subr.bf16.mxu1 %v3762_v49 }
 0x223   :  { %2811 = vmatprep.mubr.f32.mxu1 %v578_v29 }
 0x224   :  { %2812 = vmatmul.mubr.f32.gmra.mrb[2].mxu1 %v579_v30 }
 0x225   :  { %3070 = vmatpush3.bf16.msra.mxu1 %v3762_v49 }
 0x226   :  { %3072 = vmatprep.subr.bf16.mxu1 %v3767_v52 }
 0x229   :  { %3074 = vmatpush3.bf16.msra.mxu1 %v3767_v52 }
 0x22a   :  { %3076 = vmatprep.subr.bf16.mxu1 %v3771_v55 }
 0x22d   :  { %3078 = vmatpush3.bf16.msra.mxu1 %v3771_v55 }
 0x22e   :  { %3080 = vmatprep.subr.bf16.mxu1 %v3775_v58 }
 0x231   :  { %3082 = vmatpush3.bf16.msra.mxu1 %v3775_v58 }
 0x232   :  { %3084 = vmatprep.subr.bf16.mxu1 %v3779_v61 }
 0x235   :  { %3086 = vmatpush3.bf16.msra.mxu1 %v3779_v61 }
 0x236   :  { %3088 = vmatprep.subr.bf16.mxu1 %v3783_v1 }
 0x239   :  { %3090 = vmatpush3.bf16.msra.mxu1 %v3783_v1 }
 0x23a   :  { %3092 = vmatprep.subr.bf16.mxu1 %v3059_v21 }
 0x23d   :  { %3094 = vmatpush3.bf16.msra.mxu1 %v3059_v21 }
 0x23e   :  { %3095 = vmatprep.subr.bf16.mxu1 %v3532_v51 }
 0x2f3   :  { %v2810_v47 = vpop.f32.mrb[0].mxu1 }
 0x2f4   :  { %v664_v49 = vpop.f32.mrb[1].mxu1 }
 0x2f5   :  { %v683_v52 = vadd.f32 %v2810_v47, %v664_v49  ;;  %v990_v47 = vld [vmem:[#allocation10 + $0x108] sm:$0xff] }
 0x2f7   :  { %v2813_v31 = vpop.f32.mrb[2].mxu1 }
 0x2f8   :  { %v674_v32 = vpop.f32.mrb[3].mxu1 }
 0x2f9   :  { %v684_v55 = vadd.f32 %v683_v52, %v674_v32 }
 0x2fb   :  { %v685_v33 = vadd.f32 %v2813_v31, %v684_v55  ;;  %v2496_v55 = vld [vmem:[%s4051_s4] ss:$0 sm:$0xff] }
 0x2fd   :  { %v686_v34 = vrot.slane %v685_v33, 4 }
 0x2ff   :  { %v687_v35 = vadd.f32 %v686_v34, %v685_v33 }
 0x301   :  { %v688_v58 = vrot.slane %v687_v35, 2 }
 0x303   :  { %v689_v36 = vadd.f32 %v688_v58, %v687_v35 }
 0x305   :  { %v690_v37 = vrot.slane %v689_v36, 1 }
 0x307   :  { %v691_v38 = vadd.f32 %v690_v37, %v689_v36  ;;  %v991_v37 = vld [vmem:[#allocation10 + $0x110] sm:$0xff] }
 0x309   :  { %v692_v61 = vmul.f32 0.001953125, %v691_v38  ;;  %v992_v38 = vld [vmem:[#allocation10 + $0x118] sm:$0xff] }
 0x30b   :  { %v3822_v39 = vsub.f32 %v576_v25, %v692_v61  ;;  %v3824_v40 = vsub.f32 %v577_v26, %v692_v61  ;;  %v3826_v1 = vsub.f32 %v578_v29, %v692_v61  ;;  %v3832_v43 = vsub.f32 %v579_v30, %v692_v61  ;;  %v988_v25 = vld [vmem:[#allocation10 + $0xf8] sm:$0xff]  ;;  %v2495_v29 = vld [vmem:[%s4050_s3] ss:$0 sm:$0xff]  ;;  %v989_v30 = vld [vmem:[#allocation10 + $0x100] sm:$0xff] }
 0x30c   :  { %v826_v26 = vlaneseq  ;;  %v3114_v27 = vpack.c.bf16 %v988_v25, %v987_v24  ;;  %v3117_v33 = vpack.c.bf16 %v990_v47, %v989_v30  ;;  %v915_v25 = vld [vmem:[#allocation10 + $0x20] sm:$0xff] }
 0x30d   :  { %v697_v41 = vmul.f32 %v3822_v39, %v3822_v39  ;;  %v698_v42 = vmul.f32 %v3824_v40, %v3824_v40  ;;  %v699_v44 = vmul.f32 %v3826_v1, %v3826_v1  ;;  %v700_v45 = vmul.f32 %v3832_v43, %v3832_v43 }
 0x30e   :  { %vm828_vm8 = vcmp.lt.s32.totalorder %v826_v26, 144 }
 0x30f   :  { %2846 = vmatprep.mubr.f32.mxu1 %v697_v41  ;;  %830 = vst.msk [vmem:[#allocation3] ss:$8 sm:$0x3] %vm828_vm8, %v3527_v0  ;;  %833 = vst.msk [vmem:[#allocation3 + $0x30] ss:$8 sm:$0x3] %vm828_vm8, %v3527_v0  ;;  %v3120_v41 = vpack.c.bf16 %v992_v38, %v991_v37 }
 0x310   :  { %2847 = vmatmul.mubr.f32.vlgmr.msra.gmra.mrb[4].mxu1 %v698_v42  ;;  %836 = vst.msk [vmem:[#allocation3 + $0x21] ss:$8 sm:$0x3] %vm828_vm8, %v3527_v0  ;;  %839 = vst.msk [vmem:[#allocation3 + $0x51] ss:$8 sm:$0x3] %vm828_vm8, %v3527_v0 }
 0x311   :  { %2849 = vmatprep.mubr.f32.mxu1 %v699_v44  ;;  %3097 = vmatpush1.bf16.msra.mxu1 %v3096_v53  ;;  %v918_v37 = vld [vmem:[#allocation10 + $0x38] sm:$0xff] }
 0x312   :  { %3098 = vmatprep.subr.bf16.mxu1 %v3532_v51 }
 0x314   :  { %2850 = vmatmul.mubr.f32.gmra.mrb[6].mxu1 %v700_v45 }
 0x315   :  { %3100 = vmatpush1.bf16.msra.mxu1 %v3099_v56 }
 0x316   :  { %3101 = vmatprep.subr.bf16.mxu1 %v3532_v51 }
 0x319   :  { %3103 = vmatpush1.bf16.msra.mxu1 %v3102_v60 }
 0x31a   :  { %3104 = vmatprep.subr.bf16.mxu1 %v3532_v51 }
 0x31d   :  { %3106 = vmatpush1.bf16.msra.mxu1 %v3105_v2 }
 0x31e   :  { %3107 = vmatprep.subr.bf16.mxu1 %v3532_v51 }
 0x321   :  { %3109 = vmatpush1.bf16.msra.mxu1 %v3108_v5  ;;  %v912_v5 = vld [vmem:[#allocation10 + $0x8] sm:$0xff] }
 0x322   :  { %3110 = vmatprep.subr.bf16.mxu1 %v3532_v51 }
 0x325   :  { %3112 = vmatpush1.bf16.msra.mxu1 %v3111_v8 }
 0x326   :  { %3113 = vmatprep.subr.bf16.mxu1 %v3532_v51 }
 0x329   :  { %3115 = vmatpush1.bf16.msra.mxu1 %v3114_v27  ;;  %v916_v27 = vld [vmem:[#allocation10 + $0x28] sm:$0xff] }
 0x32a   :  { %3116 = vmatprep.subr.bf16.mxu1 %v3532_v51 }
 0x32d   :  { %3118 = vmatpush1.bf16.msra.mxu1 %v3117_v33 }
 0x32e   :  { %3119 = vmatprep.subr.bf16.mxu1 %v3532_v51 }
 0x331   :  { %3121 = vmatpush1.bf16.msra.mxu1 %v3120_v41  ;;  %v920_v41 = vld [vmem:[#allocation10 + $0x48] sm:$0xff] }
 0x332   :  { %3122 = vmatprep.subr.bf16.mxu1 %v3532_v51 }
 0x3e3   :  { %v2848_v9 = vpop.f32.mrb[4].mxu1 }
 0x3e4   :  { %v767_v10 = vpop.f32.mrb[5].mxu1 }
 0x3e5   :  { %v786_v11 = vadd.f32 %v2848_v9, %v767_v10 }
 0x3e7   :  { %v2851_v12 = vpop.f32.mrb[6].mxu1 }
 0x3e8   :  { %v777_v13 = vpop.f32.mrb[7].mxu1 }
 0x3e9   :  { %v787_v14 = vadd.f32 %v786_v11, %v777_v13  ;;  %v3123_v13 = vpack.c.bf16 %v912_v5, %v911_v63  ;;  %v1226_v5 = vld [vmem:[#allocation10 + $0x130] sm:$0xff] }
 0x3eb   :  { %v788_v15 = vadd.f32 %v2851_v12, %v787_v14  ;;  %v913_v14 = vld [vmem:[#allocation10 + $0x10] sm:$0xff] }
 0x3ed   :  { %v789_v16 = vrot.slane %v788_v15, 4 }
 0x3ef   :  { %v790_v17 = vadd.f32 %v789_v16, %v788_v15 }
 0x3f1   :  { %v791_v18 = vrot.slane %v790_v17, 2 }
 0x3f3   :  { %v792_v19 = vadd.f32 %v791_v18, %v790_v17 }
 0x3f5   :  { %v793_v20 = vrot.slane %v792_v19, 1 }
 0x3f7   :  { %v794_v21 = vadd.f32 %v793_v20, %v792_v19  ;;  %v914_v19 = vld [vmem:[#allocation10 + $0x18] sm:$0xff] }
 0x3f8   :  { %v3126_v24 = vpack.c.bf16 %v914_v19, %v913_v14 }
 0x3f9   :  { %v795_v22 = vmul.f32 0.0019569471, %v794_v21 }
 0x3fb   :  { %v796_v23 = vadd.f32 1e-08, %v795_v22 }
 0x3fd   :  { %3348 = vrsqrt.f32 %v796_v23 }
 0x407   :  { %v3349_v28 = vpop.eup %3348 }
 0x408   :  { %v798_v49 = vmul.f32 %v3349_v28, %v3822_v39  ;;  %v799_v52 = vmul.f32 %v3349_v28, %v3824_v40  ;;  %v800_v31 = vmul.f32 %v3349_v28, %v3826_v1  ;;  %v801_v32 = vmul.f32 %v3349_v28, %v3832_v43 }
 0x40a   :  { %v808_v34 = vmul.f32 %v2495_v29, %v798_v49  ;;  %v809_v35 = vmul.f32 %v2495_v29, %v799_v52  ;;  %v810_v58 = vmul.f32 %v2495_v29, %v800_v31  ;;  %v811_v36 = vmul.f32 %v2495_v29, %v801_v32 }
 0x40c   :  { %v818_v61 = vadd.f32 %v2496_v55, %v808_v34  ;;  %v819_v39 = vadd.f32 %v2496_v55, %v809_v35  ;;  %v820_v40 = vadd.f32 %v2496_v55, %v810_v58  ;;  %v821_v1 = vadd.f32 %v2496_v55, %v811_v36  ;;  %v917_v36 = vld [vmem:[#allocation10 + $0x30] sm:$0xff] }
 0x40d   :  { %v3129_v58 = vpack.c.bf16 %v916_v27, %v915_v25  ;;  %v1235_v27 = vld [vmem:[#allocation10 + $0x178] sm:$0xff] }
 0x40e   :  { %v822_v42 = vmax.f32 %v818_v61, 0.0  ;;  %v823_v43 = vmax.f32 %v819_v39, 0.0  ;;  %v824_v46 = vmax.f32 %v820_v40, 0.0  ;;  %v825_v48 = vmax.f32 %v821_v1, 0.0  ;;  %v919_v1 = vld [vmem:[#allocation10 + $0x40] sm:$0xff] }
 0x40f   :  { %v3132_v40 = vpack.c.bf16 %v918_v37, %v917_v36 }
 0x410   :  { %v864_v44 = vrot.slane %v822_v42, 7  ;;  %v865_v45 = vrot.slane %v823_v43, 7  ;;  %v867_v53 = vrot.slane %v824_v46, 7  ;;  %v868_v54 = vrot.slane %v825_v48, 7  ;;  %v922_v46 = vld [vmem:[#allocation10 + $0x58] sm:$0xff] }
 0x412   :  { %870 = vrot.lane.b32.xlu0 %v864_v44, %s3521_s23  ;;  %v866_v50 = vsel %vm863_vm11, %v864_v44, %v865_v45  ;;  %v869_v56 = vsel %vm863_vm11, %v867_v53, %v868_v54  ;;  %v3135_v44 = vpack.c.bf16 %v920_v41, %v919_v1 }
 0x413   :  { %872 = vrot.lane.b32.xlu1 %v866_v50, %s3521_s23  ;;  %v923_v50 = vld [vmem:[#allocation10 + $0x60] sm:$0xff] }
 0x416   :  { %874 = vrot.lane.b32.xlu0 %v865_v45, %s3521_s23  ;;  %v921_v45 = vld [vmem:[#allocation10 + $0x50] sm:$0xff] }
 0x417   :  { %876 = vrot.lane.b32.xlu1 %v867_v53, %s3521_s23  ;;  %v3138_v48 = vpack.c.bf16 %v922_v46, %v921_v45  ;;  %v924_v53 = vld [vmem:[#allocation10 + $0x68] sm:$0xff] }
 0x41a   :  { %878 = vrot.lane.b32.xlu0 %v869_v56, %s3521_s23  ;;  %v925_v56 = vld [vmem:[#allocation10 + $0x70] sm:$0xff] }
 0x41b   :  { %880 = vrot.lane.b32.xlu1 %v868_v54, %s3521_s23  ;;  %v3141_v54 = vpack.c.bf16 %v924_v53, %v923_v50 }
 0x484   :  { %v871_v57 = vpop.permute.xlu0 %870 }
 0x485   :  { %889 = vst.msk [vmem:[#allocation3] sm:$0xfe] %vm888_vm12, %v871_v57  ;;  %v873_v59 = vpop.permute.xlu1 %872 }
 0x486   :  { %890 = vst.msk [vmem:[#allocation3 + $0x8] sm:$0xfe] %vm841_vm4, %v871_v57  ;;  %v926_v57 = vld [vmem:[#allocation10 + $0x78] sm:$0xff] }
 0x487   :  { %892 = vst.msk [vmem:[#allocation3 + $0x10] sm:$0xff] %vm891_vm13, %v873_v59 }
 0x488   :  { %893 = vst.msk [vmem:[#allocation3 + $0x18] sm:$0xff] %vm843_vm6, %v873_v59  ;;  %v875_v60 = vpop.permute.xlu0 %874  ;;  %v3144_v59 = vpack.c.bf16 %v926_v57, %v925_v56 }
 0x489   :  { %895 = vst.msk [vmem:[#allocation3 + $0x20] sm:$0x1] %vm894_vm14, %v875_v60  ;;  %v877_v62 = vpop.permute.xlu1 %876 }
 0x48a   :  { %896 = vst.msk [vmem:[#allocation3 + $0x28] sm:$0x1] %vm845_vm9, %v875_v60  ;;  %v927_v60 = vld [vmem:[#allocation10 + $0x80] sm:$0xff] }
 0x48b   :  { %897 = vst.msk [vmem:[#allocation3 + $0x30] sm:$0xfe] %vm888_vm12, %v877_v62 }
 0x48c   :  { %898 = vst.msk [vmem:[#allocation3 + $0x38] sm:$0xfe] %vm841_vm4, %v877_v62  ;;  %v879_v2 = vpop.permute.xlu0 %878  ;;  %v929_v4 = vld [vmem:[#allocation3] sm:$0xfe]  ;;  %v928_v62 = vld [vmem:[#allocation10 + $0x88] sm:$0xff]  ;;  %vm3534_vm4 = vmmov 0  }
 0x48d   :  { %v930_v3 = vld [vmem:[#allocation3 + $0x8] sm:$0xfe]  ;;  %899 = vst.msk [vmem:[#allocation3 + $0x40] sm:$0xff] %vm891_vm13, %v879_v2  ;;  %v881_v6 = vpop.permute.xlu1 %880  ;;  %v950_v10 = vrot.slane %v929_v4, 1  ;;  %v3147_v63 = vpack.c.bf16 %v928_v62, %v927_v60  ;;  %v1353_v62 = vld [vmem:[#allocation12 + $0x8] sm:$0xff] }
 0x48e   :  { %900 = vst.msk [vmem:[#allocation3 + $0x48] sm:$0xff] %vm843_vm6, %v879_v2  ;;  %v953_v8 = vrot.slane %v930_v3, 1  ;;  %v3897_v9 = vld [vmem:[#allocation3 + $0x10] sm:$0xff]  ;;  %v904_v43 = vld [vmem:[#allocation3 + $0x8] sm:$0xff]  ;;  %v1224_v2 = vld [vmem:[#allocation10 + $0x120] sm:$0xff]  ;;  %vm2474_vm6 = vcmask 74752  }
 0x48f   :  { %v3895_v7 = vld [vmem:[#allocation3 + $0x18] sm:$0xff]  ;;  %901 = vst.msk [vmem:[#allocation3 + $0x50] sm:$0x1] %vm894_vm14, %v881_v6  ;;  %v951_v12 = vrot.slane %v3897_v9, 1  ;;  %v1225_v3 = vld [vmem:[#allocation10 + $0x128] sm:$0xff] }
 0x490   :  { %902 = vst.msk [vmem:[#allocation3 + $0x58] sm:$0x1] %vm845_vm9, %v881_v6  ;;  %v954_v11 = vrot.slane %v3895_v7, 1  ;;  %v931_v18 = vld [vmem:[#allocation3 + $0x20] sm:$0x1]  ;;  %v3150_v4 = vpack.c.bf16 %v1225_v3, %v1224_v2  ;;  %v1227_v6 = vld [vmem:[#allocation10 + $0x138] sm:$0xff] }
 0x491   :  { %v952_v16 = vsel %vm949_vm15, %v950_v10, %v951_v12  ;;  %v932_v17 = vld [vmem:[#allocation3 + $0x28] sm:$0x1]  ;;  %v956_v21 = vrot.slane %v931_v18, 1  ;;  %v3153_v10 = vpack.c.bf16 %v1227_v6, %v1226_v5  ;;  %v1356_v5 = vld [vmem:[#allocation12 + $0x20] sm:$0xff]  ;;  %v1357_v6 = vld [vmem:[#allocation12 + $0x28] sm:$0xff] }
 0x492   :  { %v955_v15 = vsel %vm949_vm15, %v953_v8, %v954_v11  ;;  %v958_v20 = vrot.slane %v932_v17, 1  ;;  %v933_v30 = vld [vmem:[#allocation3 + $0x30] sm:$0xfe]  ;;  %v903_v8 = vld [vmem:[#allocation3] sm:$0xff]  ;;  %v1231_v17 = vld [vmem:[#allocation10 + $0x158] sm:$0xff] }
 0x493   :  { %2497 = vmatprep.mubr.msk.f32.mxu1 %vm993_vm0, %v955_v15  ;;  %v934_v22 = vld [vmem:[#allocation3 + $0x38] sm:$0xfe]  ;;  %v957_v47 = vsel %vm949_vm15, %v951_v12, %v956_v21  ;;  %v960_v35 = vrot.slane %v933_v30, 1  ;;  %v1229_v12 = vld [vmem:[#allocation10 + $0x148] sm:$0xff]  ;;  %v907_v18 = vld [vmem:[#allocation3 + $0x30] sm:$0xff] }
 0x494   :  { %1067 = vmatmul.mubr.f32.vlgmr.msra.gmra.mrb[8].mxu1 %v952_v16  ;;  %v959_v23 = vsel %vm949_vm15, %v954_v11, %v958_v20  ;;  %v3911_v29 = vld [vmem:[#allocation3 + $0x40] sm:$0xff]  ;;  %v963_v49 = vrot.slane %v934_v22, 1  ;;  %v1183_v15 = vld [vmem:[#allocation3 + $0x8] sm:$0xfc]  ;;  %v1230_v16 = vld [vmem:[#allocation10 + $0x150] sm:$0xff]  ;;  %v1203_v20 = vrot.slane %v3895_v7, 2 }
 0x495   :  { %3124 = vmatpush1.bf16.msra.mxu1 %v3123_v13  ;;  %2498 = vmatprep.mubr.msk.f32.mxu1 %vm993_vm0, %v959_v23  ;;  %v3909_v28 = vld [vmem:[#allocation3 + $0x48] sm:$0xff]  ;;  %v961_v31 = vrot.slane %v3911_v29, 1  ;;  %v1228_v11 = vld [vmem:[#allocation10 + $0x140] sm:$0xff]  ;;  %v908_v13 = vld [vmem:[#allocation3 + $0x38] sm:$0xff]  ;;  %v1202_v19 = vrot.slane %v1183_v15, 2  ;;  %v3159_v21 = vpack.c.bf16 %v1231_v17, %v1230_v16 }
 0x496   :  { %3125 = vmatprep.subr.bf16.mxu1 %v3532_v51  ;;  %v964_v52 = vrot.slane %v3909_v28, 1  ;;  %v935_v33 = vld [vmem:[#allocation3 + $0x50] sm:$0x1]  ;;  %v3156_v14 = vpack.c.bf16 %v1229_v12, %v1228_v11  ;;  %v1232_v22 = vld [vmem:[#allocation10 + $0x160] sm:$0xff]  ;;  %v1233_v23 = vld [vmem:[#allocation10 + $0x168] sm:$0xff] }
 0x497   :  { %v936_v32 = vld [vmem:[#allocation3 + $0x58] sm:$0x1]  ;;  %v962_v38 = vsel %vm949_vm15, %v960_v35, %v961_v31  ;;  %v966_v61 = vrot.slane %v935_v33, 1  ;;  %v3162_v25 = vpack.c.bf16 %v1233_v23, %v1232_v22  ;;  %v1240_v33 = vld [vmem:[#allocation10 + $0x1a0] sm:$0xff]  ;;  %v1185_v36 = vld [vmem:[#allocation3 + $0x28] sm:$0x3] }
 0x498   :  { %1072 = vmatmul.mubr.f32.gmra.mrb[10].mxu1 %v957_v47  ;;  %v968_v55 = vrot.slane %v936_v32, 1  ;;  %v965_v34 = vsel %vm949_vm15, %v963_v49, %v964_v52  ;;  %v1236_v47 = vld [vmem:[#allocation10 + $0x180] sm:$0xff]  ;;  %v1237_v49 = vld [vmem:[#allocation10 + $0x188] sm:$0xff]  ;;  %v1239_v32 = vld [vmem:[#allocation10 + $0x198] sm:$0xff] }
 0x499   :  { %3127 = vmatpush1.bf16.msra.mxu1 %v3126_v24  ;;  %2499 = vmatprep.mubr.msk.f32.mxu1 %vm993_vm0, %v965_v34  ;;  %v967_v42 = vsel %vm949_vm15, %v961_v31, %v966_v61  ;;  %v1204_v24 = vsel %vm1198_vm1, %v1202_v19, %v1203_v20  ;;  %v1238_v31 = vld [vmem:[#allocation10 + $0x190] sm:$0xff]  ;;  %v1241_v34 = vld [vmem:[#allocation10 + $0x1a8] sm:$0xff]  ;;  %v1182_v35 = vld [vmem:[#allocation3] sm:$0xfc]  ;;  %v1207_v61 = vrot.slane %v1185_v36, 2 }
 0x49a   :  { %3128 = vmatprep.subr.bf16.mxu1 %v3532_v51  ;;  %v969_v39 = vsel %vm949_vm15, %v964_v52, %v968_v55  ;;  %v3168_v52 = vpack.c.bf16 %v1237_v49, %v1236_v47  ;;  %v3171_v55 = vpack.c.bf16 %v1239_v32, %v1238_v31  ;;  %v1199_v37 = vrot.slane %v1182_v35, 2  ;;  %v1187_v41 = vld [vmem:[#allocation3 + $0x38] sm:$0xfc]  ;;  %v1186_v46 = vld [vmem:[#allocation3 + $0x30] sm:$0xfc]  ;;  %v1355_v3 = vld [vmem:[#allocation12 + $0x18] sm:$0xff] }
 0x49b   :  { %v1212_v45 = vrot.slane %v1187_v41, 2  ;;  %v1209_v56 = vrot.slane %v1186_v46, 2  ;;  %v1359_v11 = vld [vmem:[#allocation12 + $0x38] sm:$0xff]  ;;  %v1362_v16 = vld [vmem:[#allocation12 + $0x50] sm:$0xff]  ;;  %v1364_v19 = vld [vmem:[#allocation12 + $0x60] sm:$0xff] }
 0x49c   :  { %1077 = vmatmul.mubr.f32.gmra.mrb[12].mxu1 %v962_v38  ;;  %v1200_v38 = vrot.slane %v3897_v9, 2  ;;  %v1363_v17 = vld [vmem:[#allocation12 + $0x58] sm:$0xff]  ;;  %v1366_v22 = vld [vmem:[#allocation12 + $0x70] sm:$0xff]  ;;  %v2509_v41 = vld [vmem:[%s4054_s7] ss:$0 sm:$0xff] }
 0x49d   :  { %3130 = vmatpush1.bf16.msra.mxu1 %v3129_v58  ;;  %2500 = vmatprep.mubr.msk.f32.mxu1 %vm993_vm0, %v969_v39  ;;  %v3174_v58 = vpack.c.bf16 %v1241_v34, %v1240_v33  ;;  %v1184_v39 = vld [vmem:[#allocation3 + $0x20] sm:$0x3]  ;;  %v1367_v23 = vld [vmem:[#allocation12 + $0x78] sm:$0xff] }
 0x49e   :  { %3131 = vmatprep.subr.bf16.mxu1 %v3532_v51  ;;  %v1205_v1 = vrot.slane %v1184_v39, 2 }
 0x4a0   :  { %1082 = vmatmul.mubr.f32.gmra.mrb[14].mxu1 %v967_v42  ;;  %v1208_v42 = vsel %vm1198_vm1, %v1203_v20, %v1207_v61  ;;  %v1365_v20 = vld [vmem:[#allocation12 + $0x68] sm:$0xff] }
 0x4a1   :  { %3133 = vmatpush1.bf16.msra.mxu1 %v3132_v40  ;;  %2501 = vmatprep.mubr.msk.f32.mxu1 %vm993_vm0, %v904_v43  ;;  %v1201_v40 = vsel %vm1198_vm1, %v1199_v37, %v1200_v38  ;;  %v1213_v43 = vrot.slane %v3909_v28, 2 }
 0x4a2   :  { %3134 = vmatprep.subr.bf16.mxu1 %v3532_v51 }
 0x4a3   :  { %v1214_v50 = vsel %vm1198_vm1, %v1212_v45, %v1213_v43 }
 0x4a5   :  { %3136 = vmatpush1.bf16.msra.mxu1 %v3135_v44  ;;  %v1189_v44 = vld [vmem:[#allocation3 + $0x58] sm:$0x3] }
 0x4a6   :  { %3137 = vmatprep.subr.bf16.mxu1 %v3532_v51  ;;  %v1217_v53 = vrot.slane %v1189_v44, 2 }
 0x4a9   :  { %3139 = vmatpush1.bf16.msra.mxu1 %v3138_v48  ;;  %v1206_v48 = vsel %vm1198_vm1, %v1200_v38, %v1205_v1 }
 0x4aa   :  { %3140 = vmatprep.subr.bf16.mxu1 %v3532_v51 }
 0x4ad   :  { %3142 = vmatpush1.bf16.msra.mxu1 %v3141_v54  ;;  %v1188_v54 = vld [vmem:[#allocation3 + $0x50] sm:$0x3] }
 0x4ae   :  { %3143 = vmatprep.subr.bf16.mxu1 %v3532_v51 }
 0x4b1   :  { %3145 = vmatpush1.bf16.msra.mxu1 %v3144_v59  ;;  %v1218_v59 = vsel %vm1198_vm1, %v1213_v43, %v1217_v53 }
 0x4b2   :  { %3146 = vmatprep.subr.bf16.mxu1 %v3532_v51 }
 0x4b5   :  { %3148 = vmatpush1.bf16.msra.mxu1 %v3147_v63  ;;  %v1354_v63 = vld [vmem:[#allocation12 + $0x10] sm:$0xff] }
 0x4b6   :  { %3149 = vmatprep.subr.bf16.mxu1 %v3532_v51 }
 0x4b8   :  { %1162 = vmatmul.mubr.f32.vlgmr.msra.gmra.mrb[16].mxu1 %v903_v8  ;;  %v3184_v8 = vpack.c.bf16 %v1357_v6, %v1356_v5 }
 0x4b9   :  { %2502 = vmatprep.mubr.msk.f32.mxu1 %vm993_vm0, %v3895_v7  ;;  %3151 = vmatpush1.bf16.msra.mxu1 %v3150_v4  ;;  %v1234_v7 = vld [vmem:[#allocation10 + $0x170] sm:$0xff]  ;;  %v3180_v4 = vpack.c.bf16 %v1355_v3, %v1354_v63 }
 0x4ba   :  { %3152 = vmatprep.subr.bf16.mxu1 %v3532_v51  ;;  %v3165_v30 = vpack.c.bf16 %v1235_v27, %v1234_v7 }
 0x4bc   :  { %1167 = vmatmul.mubr.f32.gmra.mrb[18].mxu1 %v3897_v9  ;;  %v1210_v9 = vrot.slane %v3911_v29, 2 }
 0x4bd   :  { %2503 = vmatprep.mubr.msk.f32.mxu1 %vm993_vm0, %v908_v13  ;;  %3154 = vmatpush1.bf16.msra.mxu1 %v3153_v10  ;;  %v1358_v10 = vld [vmem:[#allocation12 + $0x30] sm:$0xff]  ;;  %v1360_v13 = vld [vmem:[#allocation12 + $0x40] sm:$0xff] }
 0x4be   :  { %3155 = vmatprep.subr.bf16.mxu1 %v3532_v51  ;;  %v1211_v57 = vsel %vm1198_vm1, %v1209_v56, %v1210_v9  ;;  %v3188_v12 = vpack.c.bf16 %v1359_v11, %v1358_v10 }
 0x4c0   :  { %1172 = vmatmul.mubr.f32.gmra.mrb[20].mxu1 %v907_v18  ;;  %v3196_v18 = vpack.c.bf16 %v1363_v17, %v1362_v16 }
 0x4c1   :  { %2504 = vmatprep.mubr.msk.f32.mxu1 %vm993_vm0, %v3909_v28  ;;  %3157 = vmatpush1.bf16.msra.mxu1 %v3156_v14  ;;  %v1215_v28 = vrot.slane %v1188_v54, 2  ;;  %v1361_v14 = vld [vmem:[#allocation12 + $0x48] sm:$0xff] }
 0x4c2   :  { %3158 = vmatprep.subr.bf16.mxu1 %v3532_v51  ;;  %v3192_v15 = vpack.c.bf16 %v1361_v14, %v1360_v13 }
 0x4c3   :  { %v1216_v60 = vsel %vm1198_vm1, %v1210_v9, %v1215_v28 }
 0x4c4   :  { %1177 = vmatmul.mubr.f32.gmra.mrb[22].mxu1 %v3911_v29  ;;  %v1352_v29 = vld [vmem:[#allocation12] sm:$0xff] }
 0x4c5   :  { %3160 = vmatpush1.bf16.msra.mxu1 %v3159_v21  ;;  %2505 = vmatprep.mubr.msk.f32.mxu1 %vm993_vm0, %v1204_v24  ;;  %v3176_v2 = vpack.c.bf16 %v1353_v62, %v1352_v29  ;;  %v3200_v21 = vpack.c.bf16 %v1365_v20, %v1364_v19  ;;  %v3204_v24 = vpack.c.bf16 %v1367_v23, %v1366_v22  ;;  %v1597_v23 = vld [vmem:[#allocation13 + $0x8] sm:$0xff] }
 0x4c6   :  { %3161 = vmatprep.subr.bf16.mxu1 %v3532_v51 }
 0x4c7   :  { %3177 = vmatprep.subr.bf16.mxu0 %v3176_v2 }
 0x4c8   :  { %3179 = vmatpush3.bf16.msra.mxu0 %v3176_v2 }
 0x4c9   :  { %3163 = vmatpush1.bf16.msra.mxu1 %v3162_v25  ;;  %3181 = vmatprep.subr.bf16.mxu0 %v3180_v4 }
 0x4ca   :  { %3164 = vmatprep.subr.bf16.mxu1 %v3532_v51 }
 0x4cc   :  { %3183 = vmatpush3.bf16.msra.mxu0 %v3180_v4 }
 0x4cd   :  { %3166 = vmatpush1.bf16.msra.mxu1 %v3165_v30  ;;  %3185 = vmatprep.subr.bf16.mxu0 %v3184_v8 }
 0x4ce   :  { %3167 = vmatprep.subr.bf16.mxu1 %v3532_v51 }
 0x4d0   :  { %3187 = vmatpush3.bf16.msra.mxu0 %v3184_v8 }
 0x4d1   :  { %3169 = vmatpush1.bf16.msra.mxu1 %v3168_v52  ;;  %3189 = vmatprep.subr.bf16.mxu0 %v3188_v12 }
 0x4d2   :  { %3170 = vmatprep.subr.bf16.mxu1 %v3532_v51 }
 0x4d4   :  { %3191 = vmatpush3.bf16.msra.mxu0 %v3188_v12 }
 0x4d5   :  { %3172 = vmatpush1.bf16.msra.mxu1 %v3171_v55  ;;  %3193 = vmatprep.subr.bf16.mxu0 %v3192_v15 }
 0x4d6   :  { %3173 = vmatprep.subr.bf16.mxu1 %v3532_v51 }
 0x4d8   :  { %3195 = vmatpush3.bf16.msra.mxu0 %v3192_v15 }
 0x4d9   :  { %3175 = vmatpush1.bf16.msra.mxu1 %v3174_v58  ;;  %3197 = vmatprep.subr.bf16.mxu0 %v3196_v18 }
 0x4da   :  { %3209 = vmatprep.subr.bf16.mxu1 %v3176_v2 }
 0x4dc   :  { %1315 = vmatmul.mubr.f32.vlgmr.msra.gmra.mrb[24].mxu1 %v1201_v40  ;;  %3199 = vmatpush3.bf16.msra.mxu0 %v3196_v18 }
 0x4dd   :  { %2506 = vmatprep.mubr.msk.f32.mxu1 %vm993_vm0, %v1208_v42  ;;  %3211 = vmatpush3.bf16.msra.mxu1 %v3176_v2 }
 0x4de   :  { %3213 = vmatprep.subr.bf16.mxu1 %v3180_v4  ;;  %3201 = vmatprep.subr.bf16.mxu0 %v3200_v21 }
 0x4e0   :  { %1320 = vmatmul.mubr.f32.gmra.mrb[26].mxu1 %v1206_v48  ;;  %3203 = vmatpush3.bf16.msra.mxu0 %v3200_v21 }
 0x4e1   :  { %2507 = vmatprep.mubr.msk.f32.mxu1 %vm993_vm0, %v1214_v50  ;;  %3215 = vmatpush3.bf16.msra.mxu1 %v3180_v4 }
 0x4e2   :  { %3217 = vmatprep.subr.bf16.mxu1 %v3184_v8  ;;  %3205 = vmatprep.subr.bf16.mxu0 %v3204_v24 }
 0x4e4   :  { %1325 = vmatmul.mubr.f32.gmra.mrb[28].mxu1 %v1211_v57  ;;  %3207 = vmatpush3.bf16.msra.mxu0 %v3204_v24 }
 0x4e5   :  { %2508 = vmatprep.mubr.msk.f32.mxu1 %vm993_vm0, %v1218_v59  ;;  %3219 = vmatpush3.bf16.msra.mxu1 %v3184_v8 }
 0x4e6   :  { %3221 = vmatprep.subr.bf16.mxu1 %v3188_v12 }
 0x4e8   :  { %1330 = vmatmul.mubr.f32.gmra.mrb[30].mxu1 %v1216_v60 }
 0x4e9   :  { %3223 = vmatpush3.bf16.msra.mxu1 %v3188_v12 }
 0x4ea   :  { %3225 = vmatprep.subr.bf16.mxu1 %v3192_v15 }
 0x4ed   :  { %3227 = vmatpush3.bf16.msra.mxu1 %v3192_v15 }
 0x4ee   :  { %3229 = vmatprep.subr.bf16.mxu1 %v3196_v18 }
 0x4f1   :  { %3231 = vmatpush3.bf16.msra.mxu1 %v3196_v18 }
 0x4f2   :  { %3233 = vmatprep.subr.bf16.mxu1 %v3200_v21 }
 0x4f5   :  { %3235 = vmatpush3.bf16.msra.mxu1 %v3200_v21 }
 0x4f6   :  { %3237 = vmatprep.subr.bf16.mxu1 %v3204_v24 }
 0x4f9   :  { %3239 = vmatpush3.bf16.msra.mxu1 %v3204_v24  ;;  %v1613_v24 = vld [vmem:[#allocation13 + $0x88] sm:$0xff] }
 0x567   :  { %v1068_v25 = vpop.f32.mrb[8].mxu1 }
 0x568   :  { %v1070_v7 = vpop.f32.mrb[9].mxu1 }
 0x569   :  { %v3240_v7 = vpack.c.bf16 %v1613_v24, %v1597_v23 }
 0x56b   :  { %v1073_v27 = vpop.f32.mrb[10].mxu1  ;;  %3241 = vmatprep.subr.bf16.mxu1 %v3240_v7 }
 0x56c   :  { %v1075_v30 = vpop.f32.mrb[11].mxu1 }
 0x56d   :  { %v1599_v30 = vld [vmem:[#allocation13 + $0x18] sm:$0xff] }
 0x56f   :  { %v1078_v47 = vpop.f32.mrb[12].mxu1 }
 0x570   :  { %v1080_v49 = vpop.f32.mrb[13].mxu1 }
 0x573   :  { %v1083_v52 = vpop.f32.mrb[14].mxu1 }
 0x574   :  { %v1085_v31 = vpop.f32.mrb[15].mxu1 }
 0x575   :  { %v1598_v31 = vld [vmem:[#allocation13 + $0x10] sm:$0xff] }
 0x58b   :  { %v1163_v32 = vpop.f32.mrb[16].mxu1 }
 0x58c   :  { %v1164_v55 = vadd.f32 %v1163_v32, %v1068_v25  ;;  %v1165_v33 = vpop.f32.mrb[17].mxu1  ;;  %v1596_v25 = vld [vmem:[#allocation13] sm:$0xff]  ;;  %v1614_v32 = vld [vmem:[#allocation13 + $0x90] sm:$0xff] }
 0x58d   :  { %v3250_v33 = vpack.c.bf16 %v1614_v32, %v1598_v31 }
 0x58f   :  { %v1168_v34 = vpop.f32.mrb[18].mxu1 }
 0x590   :  { %v1169_v35 = vadd.f32 %v1168_v34, %v1073_v27  ;;  %v1170_v58 = vpop.f32.mrb[19].mxu1  ;;  %v1612_v27 = vld [vmem:[#allocation13 + $0x80] sm:$0xff]  ;;  %v1645_v34 = vld [vmem:[#allocation13 + $0x188] sm:$0xff] }
 0x591   :  { %v3242_v49 = vpack.c.bf16 %v1612_v27, %v1596_v25  ;;  %v1631_v58 = vld [vmem:[#allocation13 + $0x118] sm:$0xff] }
 0x593   :  { %v1173_v36 = vpop.f32.mrb[20].mxu1 }
 0x594   :  { %v1174_v37 = vadd.f32 %v1173_v36, %v1078_v47  ;;  %v1175_v38 = vpop.f32.mrb[21].mxu1  ;;  %v1615_v47 = vld [vmem:[#allocation13 + $0x98] sm:$0xff] }
 0x595   :  { %v1647_v36 = vld [vmem:[#allocation13 + $0x198] sm:$0xff]  ;;  %v1644_v38 = vld [vmem:[#allocation13 + $0x180] sm:$0xff] }
 0x597   :  { %v1178_v61 = vpop.f32.mrb[22].mxu1 }
 0x598   :  { %v1179_v39 = vadd.f32 %v1178_v61, %v1083_v52  ;;  %v1180_v40 = vpop.f32.mrb[23].mxu1  ;;  %v3248_v52 = vpack.c.bf16 %v1615_v47, %v1599_v30  ;;  %v3252_v61 = vpack.c.bf16 %v1647_v36, %v1631_v58  ;;  %v1600_v58 = vld [vmem:[#allocation13 + $0x20] sm:$0xff] }
 0x599   :  { %v1646_v40 = vld [vmem:[#allocation13 + $0x190] sm:$0xff]  ;;  %v1616_v36 = vld [vmem:[#allocation13 + $0xa0] sm:$0xff] }
 0x59a   :  { %3249 = vmatprep.subr.bf16.mxu0 %v3248_v52 }
 0x5af   :  { %v1316_v1 = vpop.f32.mrb[24].mxu1 }
 0x5b0   :  { %v1335_v42 = vadd.f32 %v1316_v1, %v1164_v55  ;;  %v1318_v43 = vpop.f32.mrb[25].mxu1  ;;  %v1629_v55 = vld [vmem:[#allocation13 + $0x108] sm:$0xff] }
 0x5b1   :  { %v1617_v43 = vld [vmem:[#allocation13 + $0xa8] sm:$0xff] }
 0x5b2   :  { %v1346_v44 = vadd.f32 %v2509_v41, %v1335_v42  ;;  %v1601_v42 = vld [vmem:[#allocation13 + $0x28] sm:$0xff] }
 0x5b3   :  { %v1321_v45 = vpop.f32.mrb[26].mxu1 }
 0x5b4   :  { %v1336_v46 = vadd.f32 %v1321_v45, %v1169_v35  ;;  %v1323_v48 = vpop.f32.mrb[27].mxu1  ;;  %2884 = vmatprep.mubr.f32.mxu0 %v1346_v44  ;;  %v3244_v35 = vpack.c.bf16 %v1645_v34, %v1629_v55 }
 0x5b6   :  { %v1347_v9 = vadd.f32 %v2509_v41, %v1336_v46 }
 0x5b7   :  { %v1326_v50 = vpop.f32.mrb[28].mxu1 }
 0x5b8   :  { %v1337_v53 = vadd.f32 %v1326_v50, %v1174_v37  ;;  %v1328_v54 = vpop.f32.mrb[29].mxu1  ;;  %2885 = vmatmul.mubr.f32.vlgmr.msra.gmra.mrb[4].mxu0 %v1347_v9  ;;  %v1628_v37 = vld [vmem:[#allocation13 + $0x100] sm:$0xff] }
 0x5b9   :  { %3251 = vmatpush1.bf16.xpose.msra.mxu0 %v3250_v33  ;;  %v3246_v1 = vpack.c.bf16 %v1644_v38, %v1628_v37 }
 0x5ba   :  { %v1348_v56 = vadd.f32 %v2509_v41, %v1337_v53  ;;  %3253 = vmatprep.subr.bf16.mxu0 %v3252_v61 }
 0x5bb   :  { %v1331_v57 = vpop.f32.mrb[30].mxu1 }
 0x5bc   :  { %v1338_v28 = vadd.f32 %v1331_v57, %v1179_v39  ;;  %v1333_v59 = vpop.f32.mrb[31].mxu1  ;;  %2887 = vmatprep.mubr.f32.mxu0 %v1348_v56  ;;  %v1630_v39 = vld [vmem:[#allocation13 + $0x110] sm:$0xff] }
 0x5be   :  { %v1349_v60 = vadd.f32 %v2509_v41, %v1338_v28  ;;  %v3254_v41 = vpack.c.bf16 %v1646_v40, %v1630_v39 }
 0x5c0   :  { %2888 = vmatmul.mubr.f32.gmra.mrb[6].mxu0 %v1349_v60 }
 0x5c1   :  { %3255 = vmatpush1.bf16.xpose.msra.mxu0 %v3254_v41  ;;  %v1633_v41 = vld [vmem:[#allocation13 + $0x128] sm:$0xff] }
 0x68b   :  { %v2886_v29 = vpop.f32.mrb[4].mxu0 }
 0x68c   :  { %v1434_v62 = vpop.f32.mrb[5].mxu0 }
 0x68d   :  { %v1453_v63 = vadd.f32 %v2886_v29, %v1434_v62 }
 0x693   :  { %v2889_v2 = vpop.f32.mrb[6].mxu0 }
 0x694   :  { %v1444_v3 = vpop.f32.mrb[7].mxu0 }
 0x695   :  { %v1454_v4 = vadd.f32 %v1453_v63, %v1444_v3 }
 0x697   :  { %v1455_v5 = vadd.f32 %v2889_v2, %v1454_v4  ;;  %v2510_v4 = vld [vmem:[%s4055_s8] ss:$0 sm:$0xff] }
 0x699   :  { %v1456_v6 = vrot.slane %v1455_v5, 4 }
 0x69b   :  { %v1457_v8 = vadd.f32 %v1456_v6, %v1455_v5 }
 0x69d   :  { %v1458_v10 = vrot.slane %v1457_v8, 2 }
 0x69f   :  { %v1459_v11 = vadd.f32 %v1458_v10, %v1457_v8 }
 0x6a1   :  { %v1460_v12 = vrot.slane %v1459_v11, 1 }
 0x6a3   :  { %v1461_v13 = vadd.f32 %v1460_v12, %v1459_v11  ;;  %v1677_v12 = vshrl.u32 %v826_v26, 7 }
 0x6a5   :  { %v1462_v14 = vmul.f32 0.001953125, %v1461_v13  ;;  %v2511_v13 = vld [vmem:[%s4056_s9] ss:$0 sm:$0xff] }
 0x6a7   :  { %v3965_v15 = vsub.f32 %v1346_v44, %v1462_v14  ;;  %v3967_v16 = vsub.f32 %v1347_v9, %v1462_v14  ;;  %v3969_v17 = vsub.f32 %v1348_v56, %v1462_v14  ;;  %v3975_v20 = vsub.f32 %v1349_v60, %v1462_v14 }
 0x6a8   :  { %v3256_v44 = vpack.c.bf16 %v1617_v43, %v1601_v42  ;;  %v1649_v42 = vld [vmem:[#allocation13 + $0x1a8] sm:$0xff] }
 0x6a9   :  { %v1467_v18 = vmul.f32 %v3965_v15, %v3965_v15  ;;  %v1468_v19 = vmul.f32 %v3967_v16, %v3967_v16  ;;  %v1469_v21 = vmul.f32 %v3969_v17, %v3969_v17  ;;  %v1470_v22 = vmul.f32 %v3975_v20, %v3975_v20 }
 0x6aa   :  { %3257 = vmatprep.subr.bf16.mxu0 %v3256_v44 }
 0x6ab   :  { %2922 = vmatprep.mubr.f32.mxu1 %v1467_v18 }
 0x6ac   :  { %2923 = vmatmul.mubr.f32.vlgmr.msra.gmra.mrb[32].mxu1 %v1468_v19 }
 0x6ad   :  { %2925 = vmatprep.mubr.f32.mxu1 %v1469_v21  ;;  %3243 = vmatpush1.bf16.xpose.msra.mxu1 %v3242_v49 }
 0x6ae   :  { %3245 = vmatprep.subr.bf16.mxu1 %v3244_v35 }
 0x6b0   :  { %2926 = vmatmul.mubr.f32.gmra.mrb[34].mxu1 %v1470_v22 }
 0x6b5   :  { %3247 = vmatpush1.bf16.xpose.msra.mxu1 %v3246_v1 }
 0x6b6   :  { %3304 = vmatprep.subr.bf16.mxu1 %v3532_v51  ;;  %v3533_v51 = vmov 1966171168  }
 0x6b7   :  { %v1674_v2 = vunpack.c.l.s4 %v3533_v51 }
 0x6b9   :  { %v1675_v11 = vunpack.c.0.s8 %v1674_v2 }
 0x77f   :  { %v2924_v45 = vpop.f32.mrb[32].mxu1 }
 0x780   :  { %v1537_v46 = vpop.f32.mrb[33].mxu1 }
 0x781   :  { %v1556_v48 = vadd.f32 %v2924_v45, %v1537_v46  ;;  %v3258_v46 = vpack.c.bf16 %v1616_v36, %v1600_v58  ;;  %v1641_v58 = vld [vmem:[#allocation13 + $0x168] sm:$0xff] }
 0x782   :  { %v1657_v36 = vld [vmem:[#allocation13 + $0x1e8] sm:$0xff] }
 0x783   :  { %v2927_v9 = vpop.f32.mrb[34].mxu1 }
 0x784   :  { %v1547_v50 = vpop.f32.mrb[35].mxu1 }
 0x785   :  { %v1557_v53 = vadd.f32 %v1556_v48, %v1547_v50  ;;  %v1632_v50 = vld [vmem:[#allocation13 + $0x120] sm:$0xff] }
 0x787   :  { %v1558_v54 = vadd.f32 %v2927_v9, %v1557_v53  ;;  %v3260_v9 = vpack.c.bf16 %v1649_v42, %v1633_v41  ;;  %v1648_v53 = vld [vmem:[#allocation13 + $0x1a0] sm:$0xff]  ;;  %v1611_v42 = vld [vmem:[#allocation13 + $0x78] sm:$0xff] }
 0x788   :  { %v1656_v41 = vld [vmem:[#allocation13 + $0x1e0] sm:$0xff] }
 0x789   :  { %v1559_v56 = vrot.slane %v1558_v54, 4 }
 0x78b   :  { %v1560_v57 = vadd.f32 %v1559_v56, %v1558_v54  ;;  %v1603_v54 = vld [vmem:[#allocation13 + $0x38] sm:$0xff] }
 0x78c   :  { %v1619_v56 = vld [vmem:[#allocation13 + $0xb8] sm:$0xff] }
 0x78d   :  { %v1561_v28 = vrot.slane %v1560_v57, 2 }
 0x78f   :  { %v1562_v59 = vadd.f32 %v1561_v28, %v1560_v57  ;;  %v3262_v57 = vpack.c.bf16 %v1648_v53, %v1632_v50  ;;  %v3264_v28 = vpack.c.bf16 %v1619_v56, %v1603_v54  ;;  %v1643_v50 = vld [vmem:[#allocation13 + $0x178] sm:$0xff] }
 0x790   :  { %v1659_v53 = vld [vmem:[#allocation13 + $0x1f8] sm:$0xff] }
 0x791   :  { %v1563_v60 = vrot.slane %v1562_v59, 1 }
 0x793   :  { %v1564_v29 = vadd.f32 %v1563_v60, %v1562_v59  ;;  %v1602_v59 = vld [vmem:[#allocation13 + $0x30] sm:$0xff] }
 0x794   :  { %v1618_v60 = vld [vmem:[#allocation13 + $0xb0] sm:$0xff] }
 0x795   :  { %v1565_v62 = vmul.f32 0.0019569471, %v1564_v29  ;;  %v1635_v29 = vld [vmem:[#allocation13 + $0x138] sm:$0xff] }
 0x797   :  { %v1566_v63 = vadd.f32 1e-08, %v1565_v62  ;;  %v1651_v62 = vld [vmem:[#allocation13 + $0x1b8] sm:$0xff] }
 0x798   :  { %v3268_v51 = vpack.c.bf16 %v1651_v62, %v1635_v29 }
 0x799   :  { %3350 = vrsqrt.f32 %v1566_v63  ;;  %v3266_v63 = vpack.c.bf16 %v1618_v60, %v1602_v59 }
 0x7a3   :  { %v3351_v3 = vpop.eup %3350 }
 0x7a4   :  { %v1568_v5 = vmul.f32 %v3351_v3, %v3965_v15  ;;  %v1570_v6 = vmul.f32 %v3351_v3, %v3969_v17  ;;  %v1569_v8 = vmul.f32 %v3351_v3, %v3967_v16  ;;  %v1571_v10 = vmul.f32 %v3351_v3, %v3975_v20  ;;  %v1634_v3 = vld [vmem:[#allocation13 + $0x130] sm:$0xff] }
 0x7a5   :  { %v1678_v17 = vsub.s32 %v1675_v11, %v1677_v12  ;;  %v1604_v11 = vld [vmem:[#allocation13 + $0x40] sm:$0xff] }
 0x7a6   :  { %v1578_v14 = vmul.f32 %v2510_v4, %v1568_v5  ;;  %v1580_v18 = vmul.f32 %v2510_v4, %v1570_v6  ;;  %v1579_v19 = vmul.f32 %v2510_v4, %v1569_v8  ;;  %v1581_v21 = vmul.f32 %v2510_v4, %v1571_v10  ;;  %v1650_v4 = vld [vmem:[#allocation13 + $0x1b0] sm:$0xff]  ;;  %v1605_v5 = vld [vmem:[#allocation13 + $0x48] sm:$0xff]  ;;  %v1620_v12 = vld [vmem:[#allocation13 + $0xc0] sm:$0xff] }
 0x7a7   :  { %v1621_v6 = vld [vmem:[#allocation13 + $0xc8] sm:$0xff]  ;;  %v3270_v8 = vpack.c.bf16 %v1650_v4, %v1634_v3 }
 0x7a8   :  { %v1588_v22 = vadd.f32 %v2511_v13, %v1578_v14  ;;  %v1590_v23 = vadd.f32 %v2511_v13, %v1580_v18  ;;  %v1589_v15 = vadd.f32 %v2511_v13, %v1579_v19  ;;  %v1591_v24 = vadd.f32 %v2511_v13, %v1581_v21  ;;  %v1637_v13 = vld [vmem:[#allocation13 + $0x148] sm:$0xff] }
 0x7a9   :  { %v3272_v10 = vpack.c.bf16 %v1621_v6, %v1605_v5  ;;  %v1653_v14 = vld [vmem:[#allocation13 + $0x1c8] sm:$0xff]  ;;  %v3274_v18 = vpack.c.bf16 %v1620_v12, %v1604_v11 }
 0x7aa   :  { %v1592_v25 = vmax.f32 %v1588_v22, 0.0  ;;  %v1594_v16 = vmax.f32 %v1590_v23, 0.0  ;;  %v1593_v7 = vmax.f32 %v1589_v15, 0.0  ;;  %v1595_v20 = vmax.f32 %v1591_v24, 0.0  ;;  %v1636_v22 = vld [vmem:[#allocation13 + $0x140] sm:$0xff]  ;;  %v1607_v15 = vld [vmem:[#allocation13 + $0x58] sm:$0xff] }
 0x7ab   :  { %v3276_v21 = vpack.c.bf16 %v1653_v14, %v1637_v13  ;;  %v1652_v23 = vld [vmem:[#allocation13 + $0x1c0] sm:$0xff]  ;;  %v1623_v24 = vld [vmem:[#allocation13 + $0xd8] sm:$0xff] }
 0x7ac   :  { %v1671_v27 = vcombine.low %v1592_v25, %v1594_v16  ;;  %v1672_v30 = vcombine.high %v1592_v25, %v1594_v16  ;;  %v1721_v26 = vcombine.low %v1593_v7, %v1595_v20  ;;  %v1722_v47 = vcombine.high %v1593_v7, %v1595_v20  ;;  %v1606_v16 = vld [vmem:[#allocation13 + $0x50] sm:$0xff]  ;;  %v1639_v20 = vld [vmem:[#allocation13 + $0x158] sm:$0xff] }
 0x7ad   :  { %v3280_v25 = vpack.c.bf16 %v1623_v24, %v1607_v15  ;;  %v1622_v7 = vld [vmem:[#allocation13 + $0xd0] sm:$0xff] }
 0x7ae   :  { %v1679_v49 = vrot.slane %v1671_v27, %v1678_v17  ;;  %v1686_v52 = vrot.slane %v1672_v30, %v1678_v17  ;;  %v1729_v31 = vrot.slane %v1721_v26, %v1678_v17  ;;  %v1736_v32 = vrot.slane %v1722_v47, %v1678_v17  ;;  %v1655_v27 = vld [vmem:[#allocation13 + $0x1d8] sm:$0xff] }
 0x7af   :  { %v3282_v30 = vpack.c.bf16 %v1622_v7, %v1606_v16  ;;  %v3284_v26 = vpack.c.bf16 %v1655_v27, %v1639_v20  ;;  %v2513_v20 = vld [vmem:[%s4060_s13] ss:$0 sm:$0xff]  ;;  %s3486_s13 = scalar_lea.vmem %s2483_s22, 32 }
 0x7b0   :  { %v1687_v55 = vcombine.high %v1679_v49, %v1679_v49  ;;  %v1695_v33 = vrot.slane %v1679_v49, %v1678_v17  ;;  %v1688_v34 = vcombine.high %v1686_v52, %v1686_v52  ;;  %v1702_v35 = vrot.slane %v1686_v52, %v1678_v17  ;;  %v1638_v49 = vld [vmem:[#allocation13 + $0x150] sm:$0xff]  ;;  %p3487_p6 = scmp.ne.s32.totalorder %s2483_s22, %s3486_s13  ;;  %p3492_p8 = scmp.lt.s32.totalorder %s3486_s13, %s3486_s13 }
 0x7b1   :  { %v1737_v37 = vcombine.high %v1729_v31, %v1729_v31  ;;  %v3993_v38 = vrot.slane %v1729_v31, %v1678_v17  ;;  %v1738_v61 = vcombine.high %v1736_v32, %v1736_v32  ;;  %v3995_v39 = vrot.slane %v1736_v32, %v1678_v17  ;;  %v1654_v52 = vld [vmem:[#allocation13 + $0x1d0] sm:$0xff]  ;;  %v1609_v31 = vld [vmem:[#allocation13 + $0x68] sm:$0xff] }
 0x7b2   :  { %v1709_v40 = vrot.slane %v1687_v55, %v1678_v17  ;;  %v1716_v1 = vrot.slane %v1688_v34, %v1678_v17  ;;  %v1717_v48 = vcombine.high %v1695_v33, %v1695_v33  ;;  %v1718_v19 = vcombine.high %v1702_v35, %v1702_v35  ;;  %v1625_v32 = vld [vmem:[#allocation13 + $0xe8] sm:$0xff]  ;;  %v1608_v34 = vld [vmem:[#allocation13 + $0x60] sm:$0xff]  ;;  %p3493_p9 = por %p3492_p8, %p3491_p7 }
 0x7b3   :  { %v3997_v43 = vrot.slane %v1737_v37, %v1678_v17  ;;  %v3999_v44 = vrot.slane %v1738_v61, %v1678_v17  ;;  %v3278_v17 = vpack.c.bf16 %v1652_v23, %v1636_v22  ;;  %v3286_v55 = vpack.c.bf16 %v1654_v52, %v1638_v49  ;;  %v2515_v52 = vld [vmem:[%s4074_s16] ss:$0 sm:$0xff] }
 0x7b4   :  { %1851 = vmatprep.mubr.f32.mxu1 %v1709_v40  ;;  %v1719_v45 = vcombine.high %v1709_v40, %v1709_v40  ;;  %v1720_v2 = vcombine.high %v1716_v1, %v1716_v1  ;;  %v1767_v61 = vcombine.high %v3993_v38, %v3993_v38  ;;  %v3292_v40 = vpack.c.bf16 %v1657_v36, %v1641_v58  ;;  %p3494_p10 = pnand %p3493_p9, %p3487_p6 }
 0x7b5   :  { %1852 = vmatmul.mubr.f32.vlgmr.msra.gmra.mrb[36].mxu1 %v1695_v33  ;;  %v1769_v47 = vcombine.high %v3997_v43, %v3997_v43  ;;  %v3288_v33 = vpack.c.bf16 %v1625_v32, %v1609_v31  ;;  %v1770_v56 = vcombine.high %v3999_v44, %v3999_v44  ;;  %v1768_v60 = vcombine.high %v3995_v39, %v3995_v39 }
 0x7b6   :  { %1921 = vmatprep.mubr.f32.mxu0 %v1719_v45  ;;  %2932 = vmatprep.mubr.msk.f32.mxu1 %vm3534_vm4, %v3527_v0 }
 0x7b7   :  { %1922 = vmatmul.mubr.f32.vlgmr.msra.gmra.mrb[8].mxu0 %v1717_v48  ;;  %v1610_v48 = vld [vmem:[#allocation13 + $0x70] sm:$0xff] }
 0x7b8   :  { %3259 = vmatpush1.bf16.xpose.msra.mxu0 %v3258_v46  ;;  %1991 = vmatprep.mubr.f32.mxu0 %v1716_v1  ;;  %v1640_v1 = vld [vmem:[#allocation13 + $0x160] sm:$0xff] }
 0x7b9   :  { %3261 = vmatprep.subr.bf16.mxu0 %v3260_v9  ;;  %v3294_v45 = vpack.c.bf16 %v1656_v41, %v1640_v1  ;;  %v1626_v9 = vld [vmem:[#allocation13 + $0xf0] sm:$0xff] }
 0x7ba   :  { %v3298_v54 = vpack.c.bf16 %v1626_v9, %v1610_v48 }
 0x7c0   :  { %3263 = vmatpush1.bf16.xpose.msra.mxu0 %v3262_v57  ;;  %v1642_v57 = vld [vmem:[#allocation13 + $0x170] sm:$0xff] }
 0x7c1   :  { %3265 = vmatprep.subr.bf16.mxu0 %v3264_v28  ;;  %v1658_v28 = vld [vmem:[#allocation13 + $0x1f0] sm:$0xff] }
 0x7c2   :  { %v3302_v59 = vpack.c.bf16 %v1658_v28, %v1642_v57 }
 0x7c7   :  { %1992 = vmatmul.mubr.f32.vlgmr.msra.gmra.mrb[8].mxu0 %v1702_v35  ;;  %v1624_v35 = vld [vmem:[#allocation13 + $0xe0] sm:$0xff] }
 0x7c8   :  { %3267 = vmatpush1.bf16.xpose.msra.mxu0 %v3266_v63  ;;  %2061 = vmatprep.mubr.f32.mxu0 %v1720_v2  ;;  %v3290_v37 = vpack.c.bf16 %v1624_v35, %v1608_v34  ;;  %v2385_v63 = vld [vmem:[%s4062_s15] sm:$0xff] }
 0x7c9   :  { %3269 = vmatprep.subr.bf16.mxu0 %v3268_v51 }
 0x7d0   :  { %3271 = vmatpush1.bf16.xpose.msra.mxu0 %v3270_v8 }
 0x7d1   :  { %3273 = vmatprep.subr.bf16.mxu0 %v3272_v10 }
 0x7d7   :  { %2062 = vmatmul.mubr.f32.vlgmr.msra.gmra.mrb[8].mxu0 %v1718_v19 }
 0x7d8   :  { %3275 = vmatpush1.bf16.xpose.msra.mxu0 %v3274_v18  ;;  %2131 = vmatprep.mubr.f32.mxu0 %v3997_v43  ;;  %v1627_v43 = vld [vmem:[#allocation13 + $0xf8] sm:$0xff] }
 0x7d9   :  { %3277 = vmatprep.subr.bf16.mxu0 %v3276_v21  ;;  %v3296_v46 = vpack.c.bf16 %v1627_v43, %v1611_v42 }
 0x7e0   :  { %3279 = vmatpush1.bf16.xpose.msra.mxu0 %v3278_v17 }
 0x7e1   :  { %3281 = vmatprep.subr.bf16.mxu0 %v3280_v25 }
 0x7e7   :  { %2132 = vmatmul.mubr.f32.vlgmr.msra.gmra.mrb[8].mxu0 %v3993_v38  ;;  %v3300_v38 = vpack.c.bf16 %v1659_v53, %v1643_v50 }
 0x7e8   :  { %3283 = vmatpush1.bf16.xpose.msra.mxu0 %v3282_v30  ;;  %2201 = vmatprep.mubr.f32.mxu0 %v1769_v47  ;;  %v2514_v30 = vld [vmem:[%s4061_s14] ss:$0 sm:$0xff] }
 0x7e9   :  { %3285 = vmatprep.subr.bf16.mxu0 %v3284_v26 }
 0x7f0   :  { %3287 = vmatpush1.bf16.xpose.msra.mxu0 %v3286_v55 }
 0x7f1   :  { %3289 = vmatprep.subr.bf16.mxu0 %v3288_v33 }
 0x7f7   :  { %2202 = vmatmul.mubr.f32.vlgmr.msra.gmra.mrb[8].mxu0 %v1767_v61 }
 0x7f8   :  { %3291 = vmatpush1.bf16.xpose.msra.mxu0 %v3290_v37  ;;  %2271 = vmatprep.mubr.f32.mxu0 %v3999_v44  ;;  %v2386_v44 = vld [vmem:[%s4062_s15 + $0x8] sm:$0x3] }
 0x7f9   :  { %3293 = vmatprep.subr.bf16.mxu0 %v3292_v40  ;;  %v3305_v51 = vpack.c.bf16 %v2386_v44, %v2385_v63 }
 0x7fb   :  { %3307 = vmatpush3.bf16.xpose.msk.msra.mxu1 %vm3306_vm3, %v3305_v51 }
 0x800   :  { %3295 = vmatpush1.bf16.xpose.msra.mxu0 %v3294_v45 }
 0x801   :  { %3297 = vmatprep.subr.bf16.mxu0 %v3296_v46 }
 0x807   :  { %2272 = vmatmul.mubr.f32.vlgmr.msra.gmra.mrb[8].mxu0 %v3995_v39  ;;  %v2512_v39 = vld [vmem:[%s4059_s12] ss:$0 sm:$0xff] }
 0x808   :  { %3299 = vmatpush1.bf16.xpose.msra.mxu0 %v3298_v54  ;;  %2341 = vmatprep.mubr.f32.mxu0 %v1770_v56 }
 0x809   :  { %3301 = vmatprep.subr.bf16.mxu0 %v3300_v38 }
 0x810   :  { %3303 = vmatpush1.bf16.xpose.msra.mxu0 %v3302_v59 }
 0x817   :  { %2342 = vmatmul.mubr.f32.vlgmr.msra.gmra.mrb[8].mxu0 %v1768_v60 }
 0x888   :  { %v1853_v29 = vpop.f32.mrb[36].mxu1 }
 0x889   :  { %v1855_v62 = vpop.f32.mrb[37].mxu1  ;;  %v1854_v2 = vadd.f32 %v2512_v39, %v1853_v29 }
 0x8ea   :  { %v2343_v3 = vpop.f32.mrb[8].mxu0 }
 0x8eb   :  { %v3309_v4 = vadd.f32 %v2343_v3, %v1854_v2  ;;  %v2345_v5 = vpop.f32.mrb[9].mxu0 }
 0x8ed   :  { %v2348_v6 = vsel %vm2347_vm5, %v3309_v4, 0.0 }
 0x8ee   :  { %v2349_v8 = vrot.slane %v2348_v6, 4 }
 0x8f0   :  { %v2350_v10 = vadd.f32 %v2349_v8, %v2348_v6 }
 0x8f2   :  { %v2351_v11 = vrot.slane %v2350_v10, 2 }
 0x8f4   :  { %v2352_v12 = vadd.f32 %v2351_v11, %v2350_v10 }
 0x8f6   :  { %v2353_v13 = vrot.slane %v2352_v12, 1 }
 0x8f8   :  { %v2354_v14 = vadd.f32 %v2353_v13, %v2352_v12 }
 0x8fa   :  { %v2355_v18 = vmul.f32 0.5, %v2354_v14 }
 0x8fc   :  { %v2356_v19 = vsub.f32 %v3309_v4, %v2355_v18 }
 0x8fe   :  { %v2357_v21 = vmul.f32 %v2356_v19, %v2356_v19 }
 0x900   :  { %v2358_v0 = vsel %vm2347_vm5, %v2357_v21, 0.0 }
 0x901   :  { %v2359_v22 = vrot.slane %v2358_v0, 4 }
 0x903   :  { %v2360_v23 = vadd.f32 %v2359_v22, %v2358_v0 }
 0x905   :  { %v2361_v15 = vrot.slane %v2360_v23, 2 }
 0x907   :  { %v2362_v24 = vadd.f32 %v2361_v15, %v2360_v23 }
 0x909   :  { %v2363_v17 = vrot.slane %v2362_v24, 1 }
 0x90b   :  { %v2364_v25 = vadd.f32 %v2363_v17, %v2362_v24 }
 0x90d   :  { %v2366_v16 = vadd.f32 1e-08, %v2364_v25 }
 0x90f   :  { %3352 = vrsqrt.f32 %v2366_v16 }
 0x919   :  { %v3353_v7 = vpop.eup %3352 }
 0x91a   :  { %v2368_v27 = vmul.f32 %v3353_v7, %v2356_v19 }
 0x91c   :  { %v2375_v26 = vmul.f32 %v2513_v20, %v2368_v27 }
 0x91e   :  { %v2383_v47 = vadd.f32 %v2514_v30, %v2375_v26 }
 0x920   :  { %v2384_v49 = vmax.f32 %v2383_v47, 0.0 }
 0x922   :  { %2933 = vmatmul.mubr.msk.f32.vlgmr.msra.gmra.mrb[38].mxu1 %vm2394_vm2, %v2384_v49 }
 0x9f5   :  { %v2470_v31 = vpop.f32.mrb[38].mxu1 }
 0x9f6   :  { %v2471_v32 = vadd.f32 %v2515_v52, %v2470_v31  ;;  %v2934_v55 = vpop.f32.mrb[39].mxu1 }
 0x9f8   :  { %2475 = vst.msk [vmem:[#allocation15] sm:$0x3] %vm2474_vm6, %v2471_v32 }
 0x9f9   :  { %3497 = shalt.err (!%p3494_p10)
}
 0x9fa   :  { %s4075_s17 = sld [smem:[#allocation24_spill]] }
 0xa00   :  { %s3498_s28 = scalar_lea.hbm %s4075_s17, 32 }
 0xa01   :  { %p3499_p11 = scmp.ne.s32.totalorder %s4075_s17, %s3498_s28  ;;  %p3502_p12 = scmp.lt.u32.totalorder %s3498_s28, %s4075_s17 }
 0xa03   :  { %p3504_p13 = pnand %p3502_p12, %p3499_p11 }
 0xa05   :  { %3507 = shalt.err (!%p3504_p13)
}
 0xa06   :  { %2485 = dma.vmem_to_hbm [thread:$0]  %s2483_s22, 32, %s4075_s17, [#allocation6]  }
 0xa07   :  { %3516 = dma.done.wait [#allocation6], 32  }
 0xa08   :  { %3517 = vsyncadd [#allocation6], 4294967264 }
 0xa09   :  { %2489 = vsyncpa [#allocation5], 1 }
 0xa0a   :  { %2490 = vsyncpa [#allocation8], 1 }
 0xa0b   :  { %2491 = vsyncpa [#allocation11], 1 }
 0xa0c   :  { %2492 = vsyncpa [#allocation14], 1 }
 0xa0d   :  { %2493 = vsyncpa [#allocation6], 1 }

</bundles_post_ra>
